<compile_context>
chip_gen: v7x
topology: tpu7x:2x2x1
jax: 0.10.0
libtpu: 0.0.40
codegen_flags: <defaults>
</compile_context>

<pallas_src>
import functools
import math

import jax
import jax.numpy as jnp
from jax.experimental import pallas as pl
from jax.experimental.pallas import tpu as pltpu


def _round_up(x, m):
    return -(-x // m) * m


# ----------------------------------------------------------------------------
# Kernel: one (batch_tile, time_chunk) grid step.
# ----------------------------------------------------------------------------
def _lstm_fc_kernel(x_ref, wih_ref, whh_ref, b_ref, wfc_ref, bfc_ref,
                    out_ref, h_sc, c_sc, xg_sc, hs_sc, *, unroll):
    """LSTM over one time chunk + chunk-batched Linear head.

    x_ref  : (tc, tb, I)     bf16  time-major input chunk
    wih_ref: (I, 4*Hp)       bf16  input->gates  (gate-block padded)
    whh_ref: (Hp, 4*Hp)      bf16  hidden->gates (gate-block padded)
    b_ref  : (1, 4*Hp)       f32   bias_ih + bias_hh (gate-block padded)
    wfc_ref: (Hp, Op)        bf16  fc.weight.T (lane padded)
    bfc_ref: (1, Op)         f32   fc.bias (lane padded)
    out_ref: (tc, tb, Op)    f32
    h_sc/c_sc : (tb, Hp) f32 recurrent state; persists across time chunks
    xg_sc  : (tc, tb, 4*Hp)  f32   per-chunk x@W_ih + b precompute
    hs_sc  : (tc, tb, Hp)    bf16  per-chunk hidden states for the FC head
    """
    tchunk = pl.program_id(1)
    tc, tb, _ = x_ref.shape
    hp = h_sc.shape[-1]

    # Reset state at the start of every batch tile (time axis is the inner,
    # "arbitrary" grid axis — do not reorder the grid).
    @pl.when(tchunk == 0)
    def _():
        h_sc[...] = jnp.zeros_like(h_sc)
        c_sc[...] = jnp.zeros_like(c_sc)

    # ---- 1) One big MXU matmul: input contribution to all gates of the chunk.
    x_flat = x_ref[...].reshape(tc * tb, -1)                       # (tc*tb, I) bf16
    xg = jnp.dot(x_flat, wih_ref[...], preferred_element_type=jnp.float32)
    xg_sc[...] = (xg + b_ref[...]).reshape(tc, tb, 4 * hp)         # f32

    # ---- 2) Sequential recurrence: only h@W_hh + gate math per step.
    def step(t, carry):
        h, c = carry
        gates = xg_sc[t] + jnp.dot(h.astype(whh_ref.dtype), whh_ref[...],
                                   preferred_element_type=jnp.float32)
        # PyTorch gate order i, f, g, o; hp is a multiple of 128 so every slice
        # below is lane-aligned (no XLU relayouts).
        i_g = jax.nn.sigmoid(gates[:, 0 * hp:1 * hp])
        f_g = jax.nn.sigmoid(gates[:, 1 * hp:2 * hp])
        g_g = jnp.tanh(gates[:, 2 * hp:3 * hp])
        o_g = jax.nn.sigmoid(gates[:, 3 * hp:4 * hp])
        c_new = f_g * c + i_g * g_g
        h_new = o_g * jnp.tanh(c_new)
        hs_sc[t] = h_new.astype(hs_sc.dtype)
        return h_new, c_new

    h, c = jax.lax.fori_loop(0, tc, step, (h_sc[...], c_sc[...]), unroll=unroll)
    h_sc[...] = h
    c_sc[...] = c

    # ---- 3) Chunk-batched FC head + one lane-dense store.
    y = (jnp.dot(hs_sc[...].reshape(tc * tb, hp), wfc_ref[...],
                 preferred_element_type=jnp.float32) + bfc_ref[...])
    out_ref[...] = y.reshape(tc, tb, -1).astype(out_ref.dtype)


# ----------------------------------------------------------------------------
# Tiling heuristics
# ----------------------------------------------------------------------------
def _pick_batch_tile(bp):
    """bp is a multiple of 16.  Prefer >= 2 tiles (v7x megacore) when possible."""
    if bp < 32:
        return bp
    max_tb = min(bp // 2, 256)
    max_tb = max(16, (max_tb // 16) * 16)
    for tb in range(max_tb, 15, -16):
        if bp % tb == 0:
            return tb
    return 16


def _pick_time_chunk(seq_len, tb, in_dim, hp, op):
    """Largest time chunk whose per-chunk VMEM buffers fit a modest budget."""
    budget = 12 * 2 ** 20

    def need(tc):
        rows = _round_up(tb, 8)
        return (2 * tc * rows * _round_up(in_dim, 128) * 2   # x (2 bufs, bf16)
                + 2 * tc * rows * op * 4                     # out (2 bufs, f32)
                + tc * rows * 4 * hp * 4                     # xg scratch f32
                + tc * rows * hp * 2)                        # hs scratch bf16

    tc = min(seq_len, 128)
    while tc > 1 and need(tc) > budget:
        tc = (tc + 1) // 2
    return tc


# ----------------------------------------------------------------------------
# Forward wrapper
# ----------------------------------------------------------------------------
def lstm_model_forward(x, w_ih, w_hh, b, w_fc, b_fc):
    """Forward pass of LSTModel.

    x    : [B, T, input] (batch_first) or [T, input]
    w_ih : [input, 4*hidden]   (= PyTorch weight_ih_l0.T)
    w_hh : [hidden, 4*hidden]  (= PyTorch weight_hh_l0.T)
    b    : [4*hidden]          (= bias_ih_l0 + bias_hh_l0)
    w_fc : [hidden, output]    (= fc.weight.T)
    b_fc : [output]
    returns [B, T, output] (or [T, output] for 2-D input)
    """
    squeeze_batch = (x.ndim == 2)
    if squeeze_batch:
        x = x[None]                                        # [1, T, I]

    batch, seq_len, in_dim = x.shape
    hidden = w_hh.shape[0]
    out_dim = w_fc.shape[1]

    hp = _round_up(hidden, 128)          # lane-aligned per-gate width
    op = _round_up(out_dim, 128)         # lane-dense output width

    # ---- gate-block padded weights: gate k occupies columns [k*hp, k*hp+hidden).
    # Padded hidden lanes have zero weights/bias, so their h/c stay exactly 0.
    def pad_gates(w, rows):
        w4 = w.reshape(w.shape[0], 4, hidden)
        out = jnp.zeros((rows, 4, hp), jnp.float32)
        out = out.at[:w.shape[0], :, :hidden].set(w4.astype(jnp.float32))
        return out.reshape(rows, 4 * hp)

    w_ih_p = pad_gates(w_ih, in_dim).astype(jnp.bfloat16)
    w_hh_p = pad_gates(w_hh, hp).astype(jnp.bfloat16)
    b_p = pad_gates(b.reshape(1, 4 * hidden), 1)                    # f32 (1, 4hp)
    w_fc_p = (jnp.zeros((hp, op), jnp.float32)
              .at[:hidden, :out_dim].set(w_fc.astype(jnp.float32))
              .astype(jnp.bfloat16))
    b_fc_p = jnp.zeros((1, op), jnp.float32).at[0, :out_dim].set(
        b_fc.astype(jnp.float32))

    # ---- batch / time tiling (batch padded to a multiple of 16 for clean bf16
    # sublane packing; time padded to a multiple of the chunk).
    bp = _round_up(max(batch, 1), 16)
    tb = _pick_batch_tile(bp)
    tc = _pick_time_chunk(seq_len, tb, in_dim, hp, op)
    tp = _round_up(seq_len, tc)
    n_btiles = bp // tb
    n_tchunks = tp // tc

    # Stage x time-major ([T, B, I]) so per-step accesses in the kernel are
    # contiguous; zero-pad batch/time; stream as bf16.
    x_tbi = jnp.transpose(x, (1, 0, 2)).astype(jnp.bfloat16)
    x_tbi = jnp.pad(x_tbi, ((0, tp - seq_len), (0, bp - batch), (0, 0)))

    # ---- VMEM budget (padded to (8,128) tiles, 1.5x headroom), per-generation cap.
    def tile_bytes(lead, sub, lane, itemsize):
        return lead * _round_up(max(sub, 1), 8) * _round_up(max(lane, 1), 128) * itemsize

    need = (2 * tile_bytes(tc, tb, in_dim, 2)          # x, double-buffered
            + 2 * tile_bytes(tc, tb, op, 4)            # out, double-buffered
            + 2 * (tile_bytes(1, in_dim, 4 * hp, 2)    # W_ih
                   + tile_bytes(1, hp, 4 * hp, 2)      # W_hh
                   + tile_bytes(1, 1, 4 * hp, 4)       # bias
                   + tile_bytes(1, hp, op, 2)          # W_fc
                   + tile_bytes(1, 1, op, 4))          # b_fc
            + 2 * tile_bytes(1, tb, hp, 4)             # h, c state
            + tile_bytes(tc, tb, 4 * hp, 4)            # xg scratch
            + tile_bytes(tc, tb, hp, 2))               # hs scratch
    try:
        vmem_cap = int(pltpu.get_tpu_info().vmem_capacity_bytes)
    except Exception:
        vmem_cap = 64 * 2 ** 20                        # conservative (v7x-sized)
    vmem_limit = int(min(max(int(1.5 * need) + (4 << 20), 16 << 20),
                         max(vmem_cap - (24 << 20), 32 << 20)))

    cost = pl.CostEstimate(
        flops=2 * bp * tp * (in_dim * 4 * hp + hp * 4 * hp + hp * op),
        transcendentals=5 * bp * tp * hp,
        bytes_accessed=(x_tbi.size * 2 + tp * bp * op * 4
                        + w_ih_p.size * 2 + w_hh_p.size * 2 + w_fc_p.size * 2
                        + b_p.size * 4 + b_fc_p.size * 4),
    )

    kernel = functools.partial(_lstm_fc_kernel, unroll=bool(tc <= 16))

    out_tbo = pl.pallas_call(
        kernel,
        out_shape=jax.ShapeDtypeStruct((tp, bp, op), jnp.float32),
        grid_spec=pltpu.PrefetchScalarGridSpec(
            num_scalar_prefetch=0,
            grid=(n_btiles, n_tchunks),
            in_specs=[
                pl.BlockSpec((tc, tb, in_dim), lambda bt, t: (t, bt, 0)),   # x
                pl.BlockSpec((in_dim, 4 * hp), lambda bt, t: (0, 0)),       # W_ih
                pl.BlockSpec((hp, 4 * hp), lambda bt, t: (0, 0)),           # W_hh
                pl.BlockSpec((1, 4 * hp), lambda bt, t: (0, 0)),            # bias
                pl.BlockSpec((hp, op), lambda bt, t: (0, 0)),               # W_fc
                pl.BlockSpec((1, op), lambda bt, t: (0, 0)),                # b_fc
            ],
            out_specs=pl.BlockSpec((tc, tb, op), lambda bt, t: (t, bt, 0)),
            scratch_shapes=[
                pltpu.VMEM((tb, hp), jnp.float32),           # h state
                pltpu.VMEM((tb, hp), jnp.float32),           # c state
                pltpu.VMEM((tc, tb, 4 * hp), jnp.float32),   # x-gate precompute
                pltpu.VMEM((tc, tb, hp), jnp.bfloat16),      # per-chunk hiddens
            ],
        ),
        compiler_params=pltpu.CompilerParams(
            dimension_semantics=("parallel", "arbitrary"),
            vmem_limit_bytes=vmem_limit,
        ),
        cost_estimate=cost,
    )(x_tbi, w_ih_p, w_hh_p, b_p, w_fc_p, b_fc_p)

    out = jnp.transpose(out_tbo[:seq_len, :batch, :out_dim], (1, 0, 2))  # [B,T,O]
    if squeeze_batch:
        out = out[0]
    return out


# ----------------------------------------------------------------------------
# Module mirror
# ----------------------------------------------------------------------------
class LSTModelPallas:
    """Mirror of the PyTorch LSTModel (1-layer LSTM + per-timestep Linear)."""

    def __init__(self, input_size, hidden_size, output_size, key):
        self.input_dim = input_size
        self.output_dim = output_size
        self.hidden_size = hidden_size
        self.num_layers = 1

        k = 1.0 / math.sqrt(hidden_size)
        ks = jax.random.split(key, 6)
        # Stored transposed / combined relative to PyTorch.  To load PyTorch
        # weights: w_ih = weight_ih_l0.T, w_hh = weight_hh_l0.T,
        #          b = bias_ih_l0 + bias_hh_l0, w_fc = fc.weight.T, b_fc = fc.bias.
        self.w_ih = jax.random.uniform(ks[0], (input_size, 4 * hidden_size),
                                       jnp.float32, -k, k)
        self.w_hh = jax.random.uniform(ks[1], (hidden_size, 4 * hidden_size),
                                       jnp.float32, -k, k)
        self.b = (jax.random.uniform(ks[2], (4 * hidden_size,), jnp.float32, -k, k)
                  + jax.random.uniform(ks[3], (4 * hidden_size,), jnp.float32, -k, k))
        self.w_fc = jax.random.uniform(ks[4], (hidden_size, output_size),
                                       jnp.float32, -k, k)
        self.b_fc = jax.random.uniform(ks[5], (output_size,), jnp.float32, -k, k)

    def __call__(self, x):
        return lstm_model_forward(x, self.w_ih, self.w_hh, self.b,
                                  self.w_fc, self.b_fc)


# ----------------------------------------------------------------------------
# Pure-JAX references for correctness checks
# ----------------------------------------------------------------------------
def _lstm_ref_f32(x, w_ih, w_hh, b, w_fc, b_fc):
    """Full-f32 (HIGHEST precision) reference — the PyTorch-spec numerics."""
    batch = x.shape[0]
    hidden = w_hh.shape[0]
    hp = jax.lax.Precision.HIGHEST

    def step(carry, x_t):
        h, c = carry
        g = jnp.dot(x_t, w_ih, precision=hp) + jnp.dot(h, w_hh, precision=hp) + b
        i = jax.nn.sigmoid(g[:, 0 * hidden:1 * hidden])
        f = jax.nn.sigmoid(g[:, 1 * hidden:2 * hidden])
        gg = jnp.tanh(g[:, 2 * hidden:3 * hidden])
        o = jax.nn.sigmoid(g[:, 3 * hidden:4 * hidden])
        c = f * c + i * gg
        h = o * jnp.tanh(c)
        y = jnp.dot(h, w_fc, precision=hp) + b_fc
        return (h, c), y

    init = (jnp.zeros((batch, hidden), jnp.float32),
            jnp.zeros((batch, hidden), jnp.float32))
    _, ys = jax.lax.scan(step, init, jnp.transpose(x, (1, 0, 2)))
    return jnp.transpose(ys, (1, 0, 2))


def _lstm_ref_mixed(x, w_ih, w_hh, b, w_fc, b_fc):
    """Reference matching the kernel's mixed precision (bf16 matmul inputs,
    f32 accumulation and gate math)."""
    batch = x.shape[0]
    hidden = w_hh.shape[0]
    xb = x.astype(jnp.bfloat16)
    wih = w_ih.astype(jnp.bfloat16)
    whh = w_hh.astype(jnp.bfloat16)
    wfc = w_fc.astype(jnp.bfloat16)

    def step(carry, x_t):
        h, c = carry
        g = (jnp.dot(x_t, wih, preferred_element_type=jnp.float32)
             + jnp.dot(h.astype(jnp.bfloat16), whh,
                       preferred_element_type=jnp.float32) + b)
        i = jax.nn.sigmoid(g[:, 0 * hidden:1 * hidden])
        f = jax.nn.sigmoid(g[:, 1 * hidden:2 * hidden])
        gg = jnp.tanh(g[:, 2 * hidden:3 * hidden])
        o = jax.nn.sigmoid(g[:, 3 * hidden:4 * hidden])
        c = f * c + i * gg
        h = o * jnp.tanh(c)
        y = (jnp.dot(h.astype(jnp.bfloat16), wfc,
                     preferred_element_type=jnp.float32) + b_fc)
        return (h, c), y

    init = (jnp.zeros((batch, hidden), jnp.float32),
            jnp.zeros((batch, hidden), jnp.float32))
    _, ys = jax.lax.scan(step, init, jnp.transpose(xb, (1, 0, 2)))
    return jnp.transpose(ys, (1, 0, 2))


# ----------------------------------------------------------------------------
# Demo / self-test
# ----------------------------------------------------------------------------
if __name__ == "__main__":
    key = jax.random.PRNGKey(0)
    k_x, k_w = jax.random.split(key)

    batch, seq_len, input_size, hidden_size, output_size = 2, 8, 16, 32, 4
    x = jax.random.normal(k_x, (batch, seq_len, input_size), dtype=jnp.float32)

    model = LSTModelPallas(input_size, hidden_size, output_size, k_w)
    y = model(x)
    y = jax.block_until_ready(y)

    assert y.shape == (batch, seq_len, output_size), y.shape
    assert bool(jnp.all(jnp.isfinite(y)))

    # Kernel numerics vs a matched mixed-precision reference (tight tolerance).
    y_mixed = _lstm_ref_mixed(x, model.w_ih, model.w_hh, model.b,
                              model.w_fc, model.b_fc)
    assert jnp.allclose(y, y_mixed, rtol=2e-3, atol=2e-3), (
        float(jnp.max(jnp.abs(y - y_mixed))))

    # Semantic fidelity vs the full-f32 PyTorch-spec reference (looser tolerance
    # due to bf16 weights / streamed activations).
    y_f32 = _lstm_ref_f32(x, model.w_ih, model.w_hh, model.b,
                          model.w_fc, model.b_fc)
    assert jnp.allclose(y, y_f32, rtol=5e-2, atol=5e-2), (
        float(jnp.max(jnp.abs(y - y_f32))))

    print("KERNEL_OK")
</pallas_src>

<mosaic_0001>
module attributes {stable_mosaic.version = 11 : i64} {
  func.func @_lstm_fc_kernel(%arg0: i32, %arg1: i32, %arg2: memref<8x16x16xbf16, #tpu.memory_space<vmem>>, %arg3: memref<16x512xbf16, #tpu.memory_space<vmem>>, %arg4: memref<128x512xbf16, #tpu.memory_space<vmem>>, %arg5: memref<1x512xf32, #tpu.memory_space<vmem>>, %arg6: memref<128x128xbf16, #tpu.memory_space<vmem>>, %arg7: memref<1x128xf32, #tpu.memory_space<vmem>>, %arg8: memref<8x16x128xf32, #tpu.memory_space<vmem>>, %arg9: memref<16x128xf32, #tpu.memory_space<vmem>>, %arg10: memref<16x128xf32, #tpu.memory_space<vmem>>, %arg11: memref<8x16x512xf32, #tpu.memory_space<vmem>>, %arg12: memref<8x16x128xbf16, #tpu.memory_space<vmem>>) attributes {dimension_semantics = [#tpu.dimension_semantics<parallel>, #tpu.dimension_semantics<arbitrary>], iteration_bounds = array<i64: 1, 1>, scalar_prefetch = 0 : i64, scratch_operands = 4 : i64, tpu.core_type = #tpu.core_type<tc>, window_params = [{transform_indices = @transform_0, window_bounds = array<i64: 8, 16, 16>}, {pipeline_mode = #tpu.pipeline_mode<synchronous>, transform_indices = @transform_1, window_bounds = array<i64: 16, 512>}, {pipeline_mode = #tpu.pipeline_mode<synchronous>, transform_indices = @transform_2, window_bounds = array<i64: 128, 512>}, {pipeline_mode = #tpu.pipeline_mode<synchronous>, transform_indices = @transform_3, window_bounds = array<i64: 1, 512>}, {pipeline_mode = #tpu.pipeline_mode<synchronous>, transform_indices = @transform_4, window_bounds = array<i64: 128, 128>}, {pipeline_mode = #tpu.pipeline_mode<synchronous>, transform_indices = @transform_5, window_bounds = array<i64: 1, 128>}, {transform_indices = @transform_6, window_bounds = array<i64: 8, 16, 128>}]} {
    %c0_i32 = arith.constant 0 : i32
    %0 = arith.cmpi eq, %arg1, %c0_i32 : i32
    %1 = arith.extui %0 : i1 to i32
    %c0_i32_0 = arith.constant 0 : i32
    %2 = arith.cmpi ne, %1, %c0_i32_0 : i32
    scf.if %2 {
      %cst_110 = arith.constant 0.000000e+00 : f32
      %321 = vector.broadcast %cst_110 : f32 to vector<16x128xf32>
      %c0_111 = arith.constant 0 : index
      %c0_112 = arith.constant 0 : index
      %322 = vector.load %arg9[%c0_111, %c0_112] : memref<16x128xf32, #tpu.memory_space<vmem>>, vector<16x128xf32>
      tpu.vector_store %arg9[%c0_111, %c0_112], %321 {strides = array<i32>} : memref<16x128xf32, #tpu.memory_space<vmem>>, vector<16x128xf32>,
      %cst_113 = arith.constant 0.000000e+00 : f32
      %323 = vector.broadcast %cst_113 : f32 to vector<16x128xf32>
      %c0_114 = arith.constant 0 : index
      %c0_115 = arith.constant 0 : index
      %324 = vector.load %arg10[%c0_114, %c0_115] : memref<16x128xf32, #tpu.memory_space<vmem>>, vector<16x128xf32>
      tpu.vector_store %arg10[%c0_114, %c0_115], %323 {strides = array<i32>} : memref<16x128xf32, #tpu.memory_space<vmem>>, vector<16x128xf32>,
    } else {
    }
    %c0 = arith.constant 0 : index
    %c0_1 = arith.constant 0 : index
    %c0_2 = arith.constant 0 : index
    %3 = vector.load %arg2[%c0, %c0_1, %c0_2] : memref<8x16x16xbf16, #tpu.memory_space<vmem>>, vector<8x16x16xbf16>
    %4 = vector.shape_cast %3 : vector<8x16x16xbf16> to vector<128x16xbf16>
    %c0_3 = arith.constant 0 : index
    %c0_4 = arith.constant 0 : index
    %5 = vector.load %arg3[%c0_3, %c0_4] : memref<16x512xbf16, #tpu.memory_space<vmem>>, vector<16x512xbf16>
    %cst = arith.constant dense<0.000000e+00> : vector<128x512xf32>
    %6 = tpu.matmul %4, %5, %cst {dimension_numbers = #tpu.dot_dimension_numbers<[1], [0], [0], [1], [0, 0, 1, 1], [], []>} : vector<128x16xbf16>, vector<16x512xbf16>, vector<128x512xf32> -> vector<128x512xf32>
    %c0_5 = arith.constant 0 : index
    %c0_6 = arith.constant 0 : index
    %7 = vector.load %arg5[%c0_5, %c0_6] : memref<1x512xf32, #tpu.memory_space<vmem>>, vector<1x512xf32>
    %8 = vector.broadcast %7 : vector<1x512xf32> to vector<128x512xf32>
    %9 = arith.addf %6, %8 : vector<128x512xf32>
    %10 = vector.shape_cast %9 : vector<128x512xf32> to vector<8x16x512xf32>
    %c0_7 = arith.constant 0 : index
    %c0_8 = arith.constant 0 : index
    %c0_9 = arith.constant 0 : index
    %11 = vector.load %arg11[%c0_7, %c0_8, %c0_9] : memref<8x16x512xf32, #tpu.memory_space<vmem>>, vector<8x16x512xf32>
    tpu.vector_store %arg11[%c0_7, %c0_8, %c0_9], %10 {strides = array<i32>} : memref<8x16x512xf32, #tpu.memory_space<vmem>>, vector<8x16x512xf32>,
    %c0_10 = arith.constant 0 : index
    %c0_11 = arith.constant 0 : index
    %12 = vector.load %arg9[%c0_10, %c0_11] : memref<16x128xf32, #tpu.memory_space<vmem>>, vector<16x128xf32>
    %c0_12 = arith.constant 0 : index
    %c0_13 = arith.constant 0 : index
    %13 = vector.load %arg10[%c0_12, %c0_13] : memref<16x128xf32, #tpu.memory_space<vmem>>, vector<16x128xf32>
    %c0_i32_14 = arith.constant 0 : i32
    %14 = arith.index_cast %c0_i32_14 : i32 to index
    %c0_15 = arith.constant 0 : index
    %c0_16 = arith.constant 0 : index
    %15 = vector.load %arg11[%14, %c0_15, %c0_16] : memref<8x16x512xf32, #tpu.memory_space<vmem>>, vector<1x16x512xf32>
    %16 = vector.shape_cast %15 : vector<1x16x512xf32> to vector<16x512xf32>
    %17 = arith.truncf %12 : vector<16x128xf32> to vector<16x128xbf16>
    %c0_17 = arith.constant 0 : index
    %c0_18 = arith.constant 0 : index
    %18 = vector.load %arg4[%c0_17, %c0_18] : memref<128x512xbf16, #tpu.memory_space<vmem>>, vector<128x512xbf16>
    %cst_19 = arith.constant dense<0.000000e+00> : vector<16x512xf32>
    %19 = tpu.matmul %17, %18, %cst_19 {dimension_numbers = #tpu.dot_dimension_numbers<[1], [0], [0], [1], [0, 0, 1, 1], [], []>} : vector<16x128xbf16>, vector<128x512xbf16>, vector<16x512xf32> -> vector<16x512xf32>
    %20 = arith.addf %16, %19 : vector<16x512xf32>
    %21 = vector.extract_strided_slice %20 {offsets = [0, 0], sizes = [16, 128], strides = [1, 1]} : vector<16x512xf32> to vector<16x128xf32>
    %22 = arith.negf %21 : vector<16x128xf32>
    %23 = math.exp %22 : vector<16x128xf32>
    %cst_20 = arith.constant 1.000000e+00 : f32
    %24 = vector.broadcast %cst_20 : f32 to vector<16x128xf32>
    %25 = arith.addf %24, %23 : vector<16x128xf32>
    %26 = arith.divf %24, %25 : vector<16x128xf32>
    %27 = vector.extract_strided_slice %20 {offsets = [0, 128], sizes = [16, 128], strides = [1, 1]} : vector<16x512xf32> to vector<16x128xf32>
    %28 = arith.negf %27 : vector<16x128xf32>
    %29 = math.exp %28 : vector<16x128xf32>
    %cst_21 = arith.constant 1.000000e+00 : f32
    %30 = vector.broadcast %cst_21 : f32 to vector<16x128xf32>
    %31 = arith.addf %30, %29 : vector<16x128xf32>
    %32 = arith.divf %30, %31 : vector<16x128xf32>
    %33 = vector.extract_strided_slice %20 {offsets = [0, 256], sizes = [16, 128], strides = [1, 1]} : vector<16x512xf32> to vector<16x128xf32>
    %34 = math.tanh %33 : vector<16x128xf32>
    %35 = vector.extract_strided_slice %20 {offsets = [0, 384], sizes = [16, 128], strides = [1, 1]} : vector<16x512xf32> to vector<16x128xf32>
    %36 = arith.negf %35 : vector<16x128xf32>
    %37 = math.exp %36 : vector<16x128xf32>
    %cst_22 = arith.constant 1.000000e+00 : f32
    %38 = vector.broadcast %cst_22 : f32 to vector<16x128xf32>
    %39 = arith.addf %38, %37 : vector<16x128xf32>
    %40 = arith.divf %38, %39 : vector<16x128xf32>
    %41 = arith.mulf %32, %13 : vector<16x128xf32>
    %42 = arith.mulf %26, %34 : vector<16x128xf32>
    %43 = arith.addf %41, %42 : vector<16x128xf32>
    %44 = math.tanh %43 : vector<16x128xf32>
    %45 = arith.mulf %40, %44 : vector<16x128xf32>
    %46 = arith.truncf %45 : vector<16x128xf32> to vector<16x128xbf16>
    %47 = arith.index_cast %c0_i32_14 : i32 to index
    %c0_23 = arith.constant 0 : index
    %c0_24 = arith.constant 0 : index
    %48 = vector.load %arg12[%47, %c0_23, %c0_24] : memref<8x16x128xbf16, #tpu.memory_space<vmem>>, vector<1x16x128xbf16>
    %49 = vector.shape_cast %48 : vector<1x16x128xbf16> to vector<16x128xbf16>
    %50 = vector.shape_cast %46 : vector<16x128xbf16> to vector<1x16x128xbf16>
    tpu.vector_store %arg12[%47, %c0_23, %c0_24], %50 {strides = array<i32>} : memref<8x16x128xbf16, #tpu.memory_space<vmem>>, vector<1x16x128xbf16>,
    %c1_i32 = arith.constant 1 : i32
    %51 = arith.index_cast %c1_i32 : i32 to index
    %c0_25 = arith.constant 0 : index
    %c0_26 = arith.constant 0 : index
    %52 = vector.load %arg11[%51, %c0_25, %c0_26] : memref<8x16x512xf32, #tpu.memory_space<vmem>>, vector<1x16x512xf32>
    %53 = vector.shape_cast %52 : vector<1x16x512xf32> to vector<16x512xf32>
    %54 = arith.truncf %45 : vector<16x128xf32> to vector<16x128xbf16>
    %c0_27 = arith.constant 0 : index
    %c0_28 = arith.constant 0 : index
    %55 = vector.load %arg4[%c0_27, %c0_28] : memref<128x512xbf16, #tpu.memory_space<vmem>>, vector<128x512xbf16>
    %cst_29 = arith.constant dense<0.000000e+00> : vector<16x512xf32>
    %56 = tpu.matmul %54, %55, %cst_29 {dimension_numbers = #tpu.dot_dimension_numbers<[1], [0], [0], [1], [0, 0, 1, 1], [], []>} : vector<16x128xbf16>, vector<128x512xbf16>, vector<16x512xf32> -> vector<16x512xf32>
    %57 = arith.addf %53, %56 : vector<16x512xf32>
    %58 = vector.extract_strided_slice %57 {offsets = [0, 0], sizes = [16, 128], strides = [1, 1]} : vector<16x512xf32> to vector<16x128xf32>
    %59 = arith.negf %58 : vector<16x128xf32>
    %60 = math.exp %59 : vector<16x128xf32>
    %cst_30 = arith.constant 1.000000e+00 : f32
    %61 = vector.broadcast %cst_30 : f32 to vector<16x128xf32>
    %62 = arith.addf %61, %60 : vector<16x128xf32>
    %63 = arith.divf %61, %62 : vector<16x128xf32>
    %64 = vector.extract_strided_slice %57 {offsets = [0, 128], sizes = [16, 128], strides = [1, 1]} : vector<16x512xf32> to vector<16x128xf32>
    %65 = arith.negf %64 : vector<16x128xf32>
    %66 = math.exp %65 : vector<16x128xf32>
    %cst_31 = arith.constant 1.000000e+00 : f32
    %67 = vector.broadcast %cst_31 : f32 to vector<16x128xf32>
    %68 = arith.addf %67, %66 : vector<16x128xf32>
    %69 = arith.divf %67, %68 : vector<16x128xf32>
    %70 = vector.extract_strided_slice %57 {offsets = [0, 256], sizes = [16, 128], strides = [1, 1]} : vector<16x512xf32> to vector<16x128xf32>
    %71 = math.tanh %70 : vector<16x128xf32>
    %72 = vector.extract_strided_slice %57 {offsets = [0, 384], sizes = [16, 128], strides = [1, 1]} : vector<16x512xf32> to vector<16x128xf32>
    %73 = arith.negf %72 : vector<16x128xf32>
    %74 = math.exp %73 : vector<16x128xf32>
    %cst_32 = arith.constant 1.000000e+00 : f32
    %75 = vector.broadcast %cst_32 : f32 to vector<16x128xf32>
    %76 = arith.addf %75, %74 : vector<16x128xf32>
    %77 = arith.divf %75, %76 : vector<16x128xf32>
    %78 = arith.mulf %69, %43 : vector<16x128xf32>
    %79 = arith.mulf %63, %71 : vector<16x128xf32>
    %80 = arith.addf %78, %79 : vector<16x128xf32>
    %81 = math.tanh %80 : vector<16x128xf32>
    %82 = arith.mulf %77, %81 : vector<16x128xf32>
    %83 = arith.truncf %82 : vector<16x128xf32> to vector<16x128xbf16>
    %84 = arith.index_cast %c1_i32 : i32 to index
    %c0_33 = arith.constant 0 : index
    %c0_34 = arith.constant 0 : index
    %85 = vector.load %arg12[%84, %c0_33, %c0_34] : memref<8x16x128xbf16, #tpu.memory_space<vmem>>, vector<1x16x128xbf16>
    %86 = vector.shape_cast %85 : vector<1x16x128xbf16> to vector<16x128xbf16>
    %87 = vector.shape_cast %83 : vector<16x128xbf16> to vector<1x16x128xbf16>
    tpu.vector_store %arg12[%84, %c0_33, %c0_34], %87 {strides = array<i32>} : memref<8x16x128xbf16, #tpu.memory_space<vmem>>, vector<1x16x128xbf16>,
    %c2_i32 = arith.constant 2 : i32
    %88 = arith.index_cast %c2_i32 : i32 to index
    %c0_35 = arith.constant 0 : index
    %c0_36 = arith.constant 0 : index
    %89 = vector.load %arg11[%88, %c0_35, %c0_36] : memref<8x16x512xf32, #tpu.memory_space<vmem>>, vector<1x16x512xf32>
    %90 = vector.shape_cast %89 : vector<1x16x512xf32> to vector<16x512xf32>
    %91 = arith.truncf %82 : vector<16x128xf32> to vector<16x128xbf16>
    %c0_37 = arith.constant 0 : index
    %c0_38 = arith.constant 0 : index
    %92 = vector.load %arg4[%c0_37, %c0_38] : memref<128x512xbf16, #tpu.memory_space<vmem>>, vector<128x512xbf16>
    %cst_39 = arith.constant dense<0.000000e+00> : vector<16x512xf32>
    %93 = tpu.matmul %91, %92, %cst_39 {dimension_numbers = #tpu.dot_dimension_numbers<[1], [0], [0], [1], [0, 0, 1, 1], [], []>} : vector<16x128xbf16>, vector<128x512xbf16>, vector<16x512xf32> -> vector<16x512xf32>
    %94 = arith.addf %90, %93 : vector<16x512xf32>
    %95 = vector.extract_strided_slice %94 {offsets = [0, 0], sizes = [16, 128], strides = [1, 1]} : vector<16x512xf32> to vector<16x128xf32>
    %96 = arith.negf %95 : vector<16x128xf32>
    %97 = math.exp %96 : vector<16x128xf32>
    %cst_40 = arith.constant 1.000000e+00 : f32
    %98 = vector.broadcast %cst_40 : f32 to vector<16x128xf32>
    %99 = arith.addf %98, %97 : vector<16x128xf32>
    %100 = arith.divf %98, %99 : vector<16x128xf32>
    %101 = vector.extract_strided_slice %94 {offsets = [0, 128], sizes = [16, 128], strides = [1, 1]} : vector<16x512xf32> to vector<16x128xf32>
    %102 = arith.negf %101 : vector<16x128xf32>
    %103 = math.exp %102 : vector<16x128xf32>
    %cst_41 = arith.constant 1.000000e+00 : f32
    %104 = vector.broadcast %cst_41 : f32 to vector<16x128xf32>
    %105 = arith.addf %104, %103 : vector<16x128xf32>
    %106 = arith.divf %104, %105 : vector<16x128xf32>
    %107 = vector.extract_strided_slice %94 {offsets = [0, 256], sizes = [16, 128], strides = [1, 1]} : vector<16x512xf32> to vector<16x128xf32>
    %108 = math.tanh %107 : vector<16x128xf32>
    %109 = vector.extract_strided_slice %94 {offsets = [0, 384], sizes = [16, 128], strides = [1, 1]} : vector<16x512xf32> to vector<16x128xf32>
    %110 = arith.negf %109 : vector<16x128xf32>
    %111 = math.exp %110 : vector<16x128xf32>
    %cst_42 = arith.constant 1.000000e+00 : f32
    %112 = vector.broadcast %cst_42 : f32 to vector<16x128xf32>
    %113 = arith.addf %112, %111 : vector<16x128xf32>
    %114 = arith.divf %112, %113 : vector<16x128xf32>
    %115 = arith.mulf %106, %80 : vector<16x128xf32>
    %116 = arith.mulf %100, %108 : vector<16x128xf32>
    %117 = arith.addf %115, %116 : vector<16x128xf32>
    %118 = math.tanh %117 : vector<16x128xf32>
    %119 = arith.mulf %114, %118 : vector<16x128xf32>
    %120 = arith.truncf %119 : vector<16x128xf32> to vector<16x128xbf16>
    %121 = arith.index_cast %c2_i32 : i32 to index
    %c0_43 = arith.constant 0 : index
    %c0_44 = arith.constant 0 : index
    %122 = vector.load %arg12[%121, %c0_43, %c0_44] : memref<8x16x128xbf16, #tpu.memory_space<vmem>>, vector<1x16x128xbf16>
    %123 = vector.shape_cast %122 : vector<1x16x128xbf16> to vector<16x128xbf16>
    %124 = vector.shape_cast %120 : vector<16x128xbf16> to vector<1x16x128xbf16>
    tpu.vector_store %arg12[%121, %c0_43, %c0_44], %124 {strides = array<i32>} : memref<8x16x128xbf16, #tpu.memory_space<vmem>>, vector<1x16x128xbf16>,
    %c3_i32 = arith.constant 3 : i32
    %125 = arith.index_cast %c3_i32 : i32 to index
    %c0_45 = arith.constant 0 : index
    %c0_46 = arith.constant 0 : index
    %126 = vector.load %arg11[%125, %c0_45, %c0_46] : memref<8x16x512xf32, #tpu.memory_space<vmem>>, vector<1x16x512xf32>
    %127 = vector.shape_cast %126 : vector<1x16x512xf32> to vector<16x512xf32>
    %128 = arith.truncf %119 : vector<16x128xf32> to vector<16x128xbf16>
    %c0_47 = arith.constant 0 : index
    %c0_48 = arith.constant 0 : index
    %129 = vector.load %arg4[%c0_47, %c0_48] : memref<128x512xbf16, #tpu.memory_space<vmem>>, vector<128x512xbf16>
    %cst_49 = arith.constant dense<0.000000e+00> : vector<16x512xf32>
    %130 = tpu.matmul %128, %129, %cst_49 {dimension_numbers = #tpu.dot_dimension_numbers<[1], [0], [0], [1], [0, 0, 1, 1], [], []>} : vector<16x128xbf16>, vector<128x512xbf16>, vector<16x512xf32> -> vector<16x512xf32>
    %131 = arith.addf %127, %130 : vector<16x512xf32>
    %132 = vector.extract_strided_slice %131 {offsets = [0, 0], sizes = [16, 128], strides = [1, 1]} : vector<16x512xf32> to vector<16x128xf32>
    %133 = arith.negf %132 : vector<16x128xf32>
    %134 = math.exp %133 : vector<16x128xf32>
    %cst_50 = arith.constant 1.000000e+00 : f32
    %135 = vector.broadcast %cst_50 : f32 to vector<16x128xf32>
    %136 = arith.addf %135, %134 : vector<16x128xf32>
    %137 = arith.divf %135, %136 : vector<16x128xf32>
    %138 = vector.extract_strided_slice %131 {offsets = [0, 128], sizes = [16, 128], strides = [1, 1]} : vector<16x512xf32> to vector<16x128xf32>
    %139 = arith.negf %138 : vector<16x128xf32>
    %140 = math.exp %139 : vector<16x128xf32>
    %cst_51 = arith.constant 1.000000e+00 : f32
    %141 = vector.broadcast %cst_51 : f32 to vector<16x128xf32>
    %142 = arith.addf %141, %140 : vector<16x128xf32>
    %143 = arith.divf %141, %142 : vector<16x128xf32>
    %144 = vector.extract_strided_slice %131 {offsets = [0, 256], sizes = [16, 128], strides = [1, 1]} : vector<16x512xf32> to vector<16x128xf32>
    %145 = math.tanh %144 : vector<16x128xf32>
    %146 = vector.extract_strided_slice %131 {offsets = [0, 384], sizes = [16, 128], strides = [1, 1]} : vector<16x512xf32> to vector<16x128xf32>
    %147 = arith.negf %146 : vector<16x128xf32>
    %148 = math.exp %147 : vector<16x128xf32>
    %cst_52 = arith.constant 1.000000e+00 : f32
    %149 = vector.broadcast %cst_52 : f32 to vector<16x128xf32>
    %150 = arith.addf %149, %148 : vector<16x128xf32>
    %151 = arith.divf %149, %150 : vector<16x128xf32>
    %152 = arith.mulf %143, %117 : vector<16x128xf32>
    %153 = arith.mulf %137, %145 : vector<16x128xf32>
    %154 = arith.addf %152, %153 : vector<16x128xf32>
    %155 = math.tanh %154 : vector<16x128xf32>
    %156 = arith.mulf %151, %155 : vector<16x128xf32>
    %157 = arith.truncf %156 : vector<16x128xf32> to vector<16x128xbf16>
    %158 = arith.index_cast %c3_i32 : i32 to index
    %c0_53 = arith.constant 0 : index
    %c0_54 = arith.constant 0 : index
    %159 = vector.load %arg12[%158, %c0_53, %c0_54] : memref<8x16x128xbf16, #tpu.memory_space<vmem>>, vector<1x16x128xbf16>
    %160 = vector.shape_cast %159 : vector<1x16x128xbf16> to vector<16x128xbf16>
    %161 = vector.shape_cast %157 : vector<16x128xbf16> to vector<1x16x128xbf16>
    tpu.vector_store %arg12[%158, %c0_53, %c0_54], %161 {strides = array<i32>} : memref<8x16x128xbf16, #tpu.memory_space<vmem>>, vector<1x16x128xbf16>,
    %c4_i32 = arith.constant 4 : i32
    %162 = arith.index_cast %c4_i32 : i32 to index
    %c0_55 = arith.constant 0 : index
    %c0_56 = arith.constant 0 : index
    %163 = vector.load %arg11[%162, %c0_55, %c0_56] : memref<8x16x512xf32, #tpu.memory_space<vmem>>, vector<1x16x512xf32>
    %164 = vector.shape_cast %163 : vector<1x16x512xf32> to vector<16x512xf32>
    %165 = arith.truncf %156 : vector<16x128xf32> to vector<16x128xbf16>
    %c0_57 = arith.constant 0 : index
    %c0_58 = arith.constant 0 : index
    %166 = vector.load %arg4[%c0_57, %c0_58] : memref<128x512xbf16, #tpu.memory_space<vmem>>, vector<128x512xbf16>
    %cst_59 = arith.constant dense<0.000000e+00> : vector<16x512xf32>
    %167 = tpu.matmul %165, %166, %cst_59 {dimension_numbers = #tpu.dot_dimension_numbers<[1], [0], [0], [1], [0, 0, 1, 1], [], []>} : vector<16x128xbf16>, vector<128x512xbf16>, vector<16x512xf32> -> vector<16x512xf32>
    %168 = arith.addf %164, %167 : vector<16x512xf32>
    %169 = vector.extract_strided_slice %168 {offsets = [0, 0], sizes = [16, 128], strides = [1, 1]} : vector<16x512xf32> to vector<16x128xf32>
    %170 = arith.negf %169 : vector<16x128xf32>
    %171 = math.exp %170 : vector<16x128xf32>
    %cst_60 = arith.constant 1.000000e+00 : f32
    %172 = vector.broadcast %cst_60 : f32 to vector<16x128xf32>
    %173 = arith.addf %172, %171 : vector<16x128xf32>
    %174 = arith.divf %172, %173 : vector<16x128xf32>
    %175 = vector.extract_strided_slice %168 {offsets = [0, 128], sizes = [16, 128], strides = [1, 1]} : vector<16x512xf32> to vector<16x128xf32>
    %176 = arith.negf %175 : vector<16x128xf32>
    %177 = math.exp %176 : vector<16x128xf32>
    %cst_61 = arith.constant 1.000000e+00 : f32
    %178 = vector.broadcast %cst_61 : f32 to vector<16x128xf32>
    %179 = arith.addf %178, %177 : vector<16x128xf32>
    %180 = arith.divf %178, %179 : vector<16x128xf32>
    %181 = vector.extract_strided_slice %168 {offsets = [0, 256], sizes = [16, 128], strides = [1, 1]} : vector<16x512xf32> to vector<16x128xf32>
    %182 = math.tanh %181 : vector<16x128xf32>
    %183 = vector.extract_strided_slice %168 {offsets = [0, 384], sizes = [16, 128], strides = [1, 1]} : vector<16x512xf32> to vector<16x128xf32>
    %184 = arith.negf %183 : vector<16x128xf32>
    %185 = math.exp %184 : vector<16x128xf32>
    %cst_62 = arith.constant 1.000000e+00 : f32
    %186 = vector.broadcast %cst_62 : f32 to vector<16x128xf32>
    %187 = arith.addf %186, %185 : vector<16x128xf32>
    %188 = arith.divf %186, %187 : vector<16x128xf32>
    %189 = arith.mulf %180, %154 : vector<16x128xf32>
    %190 = arith.mulf %174, %182 : vector<16x128xf32>
    %191 = arith.addf %189, %190 : vector<16x128xf32>
    %192 = math.tanh %191 : vector<16x128xf32>
    %193 = arith.mulf %188, %192 : vector<16x128xf32>
    %194 = arith.truncf %193 : vector<16x128xf32> to vector<16x128xbf16>
    %195 = arith.index_cast %c4_i32 : i32 to index
    %c0_63 = arith.constant 0 : index
    %c0_64 = arith.constant 0 : index
    %196 = vector.load %arg12[%195, %c0_63, %c0_64] : memref<8x16x128xbf16, #tpu.memory_space<vmem>>, vector<1x16x128xbf16>
    %197 = vector.shape_cast %196 : vector<1x16x128xbf16> to vector<16x128xbf16>
    %198 = vector.shape_cast %194 : vector<16x128xbf16> to vector<1x16x128xbf16>
    tpu.vector_store %arg12[%195, %c0_63, %c0_64], %198 {strides = array<i32>} : memref<8x16x128xbf16, #tpu.memory_space<vmem>>, vector<1x16x128xbf16>,
    %c5_i32 = arith.constant 5 : i32
    %199 = arith.index_cast %c5_i32 : i32 to index
    %c0_65 = arith.constant 0 : index
    %c0_66 = arith.constant 0 : index
    %200 = vector.load %arg11[%199, %c0_65, %c0_66] : memref<8x16x512xf32, #tpu.memory_space<vmem>>, vector<1x16x512xf32>
    %201 = vector.shape_cast %200 : vector<1x16x512xf32> to vector<16x512xf32>
    %202 = arith.truncf %193 : vector<16x128xf32> to vector<16x128xbf16>
    %c0_67 = arith.constant 0 : index
    %c0_68 = arith.constant 0 : index
    %203 = vector.load %arg4[%c0_67, %c0_68] : memref<128x512xbf16, #tpu.memory_space<vmem>>, vector<128x512xbf16>
    %cst_69 = arith.constant dense<0.000000e+00> : vector<16x512xf32>
    %204 = tpu.matmul %202, %203, %cst_69 {dimension_numbers = #tpu.dot_dimension_numbers<[1], [0], [0], [1], [0, 0, 1, 1], [], []>} : vector<16x128xbf16>, vector<128x512xbf16>, vector<16x512xf32> -> vector<16x512xf32>
    %205 = arith.addf %201, %204 : vector<16x512xf32>
    %206 = vector.extract_strided_slice %205 {offsets = [0, 0], sizes = [16, 128], strides = [1, 1]} : vector<16x512xf32> to vector<16x128xf32>
    %207 = arith.negf %206 : vector<16x128xf32>
    %208 = math.exp %207 : vector<16x128xf32>
    %cst_70 = arith.constant 1.000000e+00 : f32
    %209 = vector.broadcast %cst_70 : f32 to vector<16x128xf32>
    %210 = arith.addf %209, %208 : vector<16x128xf32>
    %211 = arith.divf %209, %210 : vector<16x128xf32>
    %212 = vector.extract_strided_slice %205 {offsets = [0, 128], sizes = [16, 128], strides = [1, 1]} : vector<16x512xf32> to vector<16x128xf32>
    %213 = arith.negf %212 : vector<16x128xf32>
    %214 = math.exp %213 : vector<16x128xf32>
    %cst_71 = arith.constant 1.000000e+00 : f32
    %215 = vector.broadcast %cst_71 : f32 to vector<16x128xf32>
    %216 = arith.addf %215, %214 : vector<16x128xf32>
    %217 = arith.divf %215, %216 : vector<16x128xf32>
    %218 = vector.extract_strided_slice %205 {offsets = [0, 256], sizes = [16, 128], strides = [1, 1]} : vector<16x512xf32> to vector<16x128xf32>
    %219 = math.tanh %218 : vector<16x128xf32>
    %220 = vector.extract_strided_slice %205 {offsets = [0, 384], sizes = [16, 128], strides = [1, 1]} : vector<16x512xf32> to vector<16x128xf32>
    %221 = arith.negf %220 : vector<16x128xf32>
    %222 = math.exp %221 : vector<16x128xf32>
    %cst_72 = arith.constant 1.000000e+00 : f32
    %223 = vector.broadcast %cst_72 : f32 to vector<16x128xf32>
    %224 = arith.addf %223, %222 : vector<16x128xf32>
    %225 = arith.divf %223, %224 : vector<16x128xf32>
    %226 = arith.mulf %217, %191 : vector<16x128xf32>
    %227 = arith.mulf %211, %219 : vector<16x128xf32>
    %228 = arith.addf %226, %227 : vector<16x128xf32>
    %229 = math.tanh %228 : vector<16x128xf32>
    %230 = arith.mulf %225, %229 : vector<16x128xf32>
    %231 = arith.truncf %230 : vector<16x128xf32> to vector<16x128xbf16>
    %232 = arith.index_cast %c5_i32 : i32 to index
    %c0_73 = arith.constant 0 : index
    %c0_74 = arith.constant 0 : index
    %233 = vector.load %arg12[%232, %c0_73, %c0_74] : memref<8x16x128xbf16, #tpu.memory_space<vmem>>, vector<1x16x128xbf16>
    %234 = vector.shape_cast %233 : vector<1x16x128xbf16> to vector<16x128xbf16>
    %235 = vector.shape_cast %231 : vector<16x128xbf16> to vector<1x16x128xbf16>
    tpu.vector_store %arg12[%232, %c0_73, %c0_74], %235 {strides = array<i32>} : memref<8x16x128xbf16, #tpu.memory_space<vmem>>, vector<1x16x128xbf16>,
    %c6_i32 = arith.constant 6 : i32
    %236 = arith.index_cast %c6_i32 : i32 to index
    %c0_75 = arith.constant 0 : index
    %c0_76 = arith.constant 0 : index
    %237 = vector.load %arg11[%236, %c0_75, %c0_76] : memref<8x16x512xf32, #tpu.memory_space<vmem>>, vector<1x16x512xf32>
    %238 = vector.shape_cast %237 : vector<1x16x512xf32> to vector<16x512xf32>
    %239 = arith.truncf %230 : vector<16x128xf32> to vector<16x128xbf16>
    %c0_77 = arith.constant 0 : index
    %c0_78 = arith.constant 0 : index
    %240 = vector.load %arg4[%c0_77, %c0_78] : memref<128x512xbf16, #tpu.memory_space<vmem>>, vector<128x512xbf16>
    %cst_79 = arith.constant dense<0.000000e+00> : vector<16x512xf32>
    %241 = tpu.matmul %239, %240, %cst_79 {dimension_numbers = #tpu.dot_dimension_numbers<[1], [0], [0], [1], [0, 0, 1, 1], [], []>} : vector<16x128xbf16>, vector<128x512xbf16>, vector<16x512xf32> -> vector<16x512xf32>
    %242 = arith.addf %238, %241 : vector<16x512xf32>
    %243 = vector.extract_strided_slice %242 {offsets = [0, 0], sizes = [16, 128], strides = [1, 1]} : vector<16x512xf32> to vector<16x128xf32>
    %244 = arith.negf %243 : vector<16x128xf32>
    %245 = math.exp %244 : vector<16x128xf32>
    %cst_80 = arith.constant 1.000000e+00 : f32
    %246 = vector.broadcast %cst_80 : f32 to vector<16x128xf32>
    %247 = arith.addf %246, %245 : vector<16x128xf32>
    %248 = arith.divf %246, %247 : vector<16x128xf32>
    %249 = vector.extract_strided_slice %242 {offsets = [0, 128], sizes = [16, 128], strides = [1, 1]} : vector<16x512xf32> to vector<16x128xf32>
    %250 = arith.negf %249 : vector<16x128xf32>
    %251 = math.exp %250 : vector<16x128xf32>
    %cst_81 = arith.constant 1.000000e+00 : f32
    %252 = vector.broadcast %cst_81 : f32 to vector<16x128xf32>
    %253 = arith.addf %252, %251 : vector<16x128xf32>
    %254 = arith.divf %252, %253 : vector<16x128xf32>
    %255 = vector.extract_strided_slice %242 {offsets = [0, 256], sizes = [16, 128], strides = [1, 1]} : vector<16x512xf32> to vector<16x128xf32>
    %256 = math.tanh %255 : vector<16x128xf32>
    %257 = vector.extract_strided_slice %242 {offsets = [0, 384], sizes = [16, 128], strides = [1, 1]} : vector<16x512xf32> to vector<16x128xf32>
    %258 = arith.negf %257 : vector<16x128xf32>
    %259 = math.exp %258 : vector<16x128xf32>
    %cst_82 = arith.constant 1.000000e+00 : f32
    %260 = vector.broadcast %cst_82 : f32 to vector<16x128xf32>
    %261 = arith.addf %260, %259 : vector<16x128xf32>
    %262 = arith.divf %260, %261 : vector<16x128xf32>
    %263 = arith.mulf %254, %228 : vector<16x128xf32>
    %264 = arith.mulf %248, %256 : vector<16x128xf32>
    %265 = arith.addf %263, %264 : vector<16x128xf32>
    %266 = math.tanh %265 : vector<16x128xf32>
    %267 = arith.mulf %262, %266 : vector<16x128xf32>
    %268 = arith.truncf %267 : vector<16x128xf32> to vector<16x128xbf16>
    %269 = arith.index_cast %c6_i32 : i32 to index
    %c0_83 = arith.constant 0 : index
    %c0_84 = arith.constant 0 : index
    %270 = vector.load %arg12[%269, %c0_83, %c0_84] : memref<8x16x128xbf16, #tpu.memory_space<vmem>>, vector<1x16x128xbf16>
    %271 = vector.shape_cast %270 : vector<1x16x128xbf16> to vector<16x128xbf16>
    %272 = vector.shape_cast %268 : vector<16x128xbf16> to vector<1x16x128xbf16>
    tpu.vector_store %arg12[%269, %c0_83, %c0_84], %272 {strides = array<i32>} : memref<8x16x128xbf16, #tpu.memory_space<vmem>>, vector<1x16x128xbf16>,
    %c7_i32 = arith.constant 7 : i32
    %273 = arith.index_cast %c7_i32 : i32 to index
    %c0_85 = arith.constant 0 : index
    %c0_86 = arith.constant 0 : index
    %274 = vector.load %arg11[%273, %c0_85, %c0_86] : memref<8x16x512xf32, #tpu.memory_space<vmem>>, vector<1x16x512xf32>
    %275 = vector.shape_cast %274 : vector<1x16x512xf32> to vector<16x512xf32>
    %276 = arith.truncf %267 : vector<16x128xf32> to vector<16x128xbf16>
    %c0_87 = arith.constant 0 : index
    %c0_88 = arith.constant 0 : index
    %277 = vector.load %arg4[%c0_87, %c0_88] : memref<128x512xbf16, #tpu.memory_space<vmem>>, vector<128x512xbf16>
    %cst_89 = arith.constant dense<0.000000e+00> : vector<16x512xf32>
    %278 = tpu.matmul %276, %277, %cst_89 {dimension_numbers = #tpu.dot_dimension_numbers<[1], [0], [0], [1], [0, 0, 1, 1], [], []>} : vector<16x128xbf16>, vector<128x512xbf16>, vector<16x512xf32> -> vector<16x512xf32>
    %279 = arith.addf %275, %278 : vector<16x512xf32>
    %280 = vector.extract_strided_slice %279 {offsets = [0, 0], sizes = [16, 128], strides = [1, 1]} : vector<16x512xf32> to vector<16x128xf32>
    %281 = arith.negf %280 : vector<16x128xf32>
    %282 = math.exp %281 : vector<16x128xf32>
    %cst_90 = arith.constant 1.000000e+00 : f32
    %283 = vector.broadcast %cst_90 : f32 to vector<16x128xf32>
    %284 = arith.addf %283, %282 : vector<16x128xf32>
    %285 = arith.divf %283, %284 : vector<16x128xf32>
    %286 = vector.extract_strided_slice %279 {offsets = [0, 128], sizes = [16, 128], strides = [1, 1]} : vector<16x512xf32> to vector<16x128xf32>
    %287 = arith.negf %286 : vector<16x128xf32>
    %288 = math.exp %287 : vector<16x128xf32>
    %cst_91 = arith.constant 1.000000e+00 : f32
    %289 = vector.broadcast %cst_91 : f32 to vector<16x128xf32>
    %290 = arith.addf %289, %288 : vector<16x128xf32>
    %291 = arith.divf %289, %290 : vector<16x128xf32>
    %292 = vector.extract_strided_slice %279 {offsets = [0, 256], sizes = [16, 128], strides = [1, 1]} : vector<16x512xf32> to vector<16x128xf32>
    %293 = math.tanh %292 : vector<16x128xf32>
    %294 = vector.extract_strided_slice %279 {offsets = [0, 384], sizes = [16, 128], strides = [1, 1]} : vector<16x512xf32> to vector<16x128xf32>
    %295 = arith.negf %294 : vector<16x128xf32>
    %296 = math.exp %295 : vector<16x128xf32>
    %cst_92 = arith.constant 1.000000e+00 : f32
    %297 = vector.broadcast %cst_92 : f32 to vector<16x128xf32>
    %298 = arith.addf %297, %296 : vector<16x128xf32>
    %299 = arith.divf %297, %298 : vector<16x128xf32>
    %300 = arith.mulf %291, %265 : vector<16x128xf32>
    %301 = arith.mulf %285, %293 : vector<16x128xf32>
    %302 = arith.addf %300, %301 : vector<16x128xf32>
    %303 = math.tanh %302 : vector<16x128xf32>
    %304 = arith.mulf %299, %303 : vector<16x128xf32>
    %305 = arith.truncf %304 : vector<16x128xf32> to vector<16x128xbf16>
    %306 = arith.index_cast %c7_i32 : i32 to index
    %c0_93 = arith.constant 0 : index
    %c0_94 = arith.constant 0 : index
    %307 = vector.load %arg12[%306, %c0_93, %c0_94] : memref<8x16x128xbf16, #tpu.memory_space<vmem>>, vector<1x16x128xbf16>
    %308 = vector.shape_cast %307 : vector<1x16x128xbf16> to vector<16x128xbf16>
    %309 = vector.shape_cast %305 : vector<16x128xbf16> to vector<1x16x128xbf16>
    tpu.vector_store %arg12[%306, %c0_93, %c0_94], %309 {strides = array<i32>} : memref<8x16x128xbf16, #tpu.memory_space<vmem>>, vector<1x16x128xbf16>,
    %c8_i32 = arith.constant 8 : i32
    %c0_95 = arith.constant 0 : index
    %c0_96 = arith.constant 0 : index
    %310 = vector.load %arg9[%c0_95, %c0_96] : memref<16x128xf32, #tpu.memory_space<vmem>>, vector<16x128xf32>
    tpu.vector_store %arg9[%c0_95, %c0_96], %304 {strides = array<i32>} : memref<16x128xf32, #tpu.memory_space<vmem>>, vector<16x128xf32>,
    %c0_97 = arith.constant 0 : index
    %c0_98 = arith.constant 0 : index
    %311 = vector.load %arg10[%c0_97, %c0_98] : memref<16x128xf32, #tpu.memory_space<vmem>>, vector<16x128xf32>
    tpu.vector_store %arg10[%c0_97, %c0_98], %302 {strides = array<i32>} : memref<16x128xf32, #tpu.memory_space<vmem>>, vector<16x128xf32>,
    %c0_99 = arith.constant 0 : index
    %c0_100 = arith.constant 0 : index
    %c0_101 = arith.constant 0 : index
    %312 = vector.load %arg12[%c0_99, %c0_100, %c0_101] : memref<8x16x128xbf16, #tpu.memory_space<vmem>>, vector<8x16x128xbf16>
    %313 = vector.shape_cast %312 : vector<8x16x128xbf16> to vector<128x128xbf16>
    %c0_102 = arith.constant 0 : index
    %c0_103 = arith.constant 0 : index
    %314 = vector.load %arg6[%c0_102, %c0_103] : memref<128x128xbf16, #tpu.memory_space<vmem>>, vector<128x128xbf16>
    %cst_104 = arith.constant dense<0.000000e+00> : vector<128x128xf32>
    %315 = tpu.matmul %313, %314, %cst_104 {dimension_numbers = #tpu.dot_dimension_numbers<[1], [0], [0], [1], [0, 0, 1, 1], [], []>} : vector<128x128xbf16>, vector<128x128xbf16>, vector<128x128xf32> -> vector<128x128xf32>
    %c0_105 = arith.constant 0 : index
    %c0_106 = arith.constant 0 : index
    %316 = vector.load %arg7[%c0_105, %c0_106] : memref<1x128xf32, #tpu.memory_space<vmem>>, vector<1x128xf32>
    %317 = vector.broadcast %316 : vector<1x128xf32> to vector<128x128xf32>
    %318 = arith.addf %315, %317 : vector<128x128xf32>
    %319 = vector.shape_cast %318 : vector<128x128xf32> to vector<8x16x128xf32>
    %c0_107 = arith.constant 0 : index
    %c0_108 = arith.constant 0 : index
    %c0_109 = arith.constant 0 : index
    %320 = vector.load %arg8[%c0_107, %c0_108, %c0_109] : memref<8x16x128xf32, #tpu.memory_space<vmem>>, vector<8x16x128xf32>
    tpu.vector_store %arg8[%c0_107, %c0_108, %c0_109], %319 {strides = array<i32>} : memref<8x16x128xf32, #tpu.memory_space<vmem>>, vector<8x16x128xf32>,
    return
  }
  func.func @transform_0(%arg0: i32, %arg1: i32) -> (i32, i32, i32) {
    %c0_i32 = arith.constant 0 : i32
    %c0_i32_0 = arith.constant 0 : i32
    return %arg1, %arg0, %c0_i32 : i32, i32, i32
  }
  func.func @transform_1(%arg0: i32, %arg1: i32) -> (i32, i32) {
    %c0_i32 = arith.constant 0 : i32
    %c0_i32_0 = arith.constant 0 : i32
    %c0_i32_1 = arith.constant 0 : i32
    return %c0_i32, %c0_i32_0 : i32, i32
  }
  func.func @transform_2(%arg0: i32, %arg1: i32) -> (i32, i32) {
    %c0_i32 = arith.constant 0 : i32
    %c0_i32_0 = arith.constant 0 : i32
    %c0_i32_1 = arith.constant 0 : i32
    return %c0_i32, %c0_i32_0 : i32, i32
  }
  func.func @transform_3(%arg0: i32, %arg1: i32) -> (i32, i32) {
    %c0_i32 = arith.constant 0 : i32
    %c0_i32_0 = arith.constant 0 : i32
    %c0_i32_1 = arith.constant 0 : i32
    return %c0_i32, %c0_i32_0 : i32, i32
  }
  func.func @transform_4(%arg0: i32, %arg1: i32) -> (i32, i32) {
    %c0_i32 = arith.constant 0 : i32
    %c0_i32_0 = arith.constant 0 : i32
    %c0_i32_1 = arith.constant 0 : i32
    return %c0_i32, %c0_i32_0 : i32, i32
  }
  func.func @transform_5(%arg0: i32, %arg1: i32) -> (i32, i32) {
    %c0_i32 = arith.constant 0 : i32
    %c0_i32_0 = arith.constant 0 : i32
    %c0_i32_1 = arith.constant 0 : i32
    return %c0_i32, %c0_i32_0 : i32, i32
  }
  func.func @transform_6(%arg0: i32, %arg1: i32) -> (i32, i32, i32) {
    %c0_i32 = arith.constant 0 : i32
    %c0_i32_0 = arith.constant 0 : i32
    return %arg1, %arg0, %c0_i32 : i32, i32, i32
  }
}

</mosaic_0001>

<bundles_post_ra>
// kernel: tpu_custom_call.1
= control target key start
LH: loop header
LB: loop body
LE: loop exit
PB: predicated region body
PF: predicated region fallthrough
CT: control target
= control target key end

     0   :  { %11 = vsyncpa [#allocation7], 0  ;;  %s5336_s0 = inlined_call_operand.hbm [shape: bf16[8,16,16], index: 0, kind: input, shape index: {}]   ;;  %s5337_s1 = inlined_call_operand.hbm [shape: bf16[16,512], index: 1, kind: input, shape index: {}]   ;;  %s5338_s2 = inlined_call_operand.hbm [shape: bf16[128,512], index: 2, kind: input, shape index: {}]   ;;  %s5339_s3 = inlined_call_operand.vmem [shape: f32[1,512], index: 3, kind: input, shape index: {}]   ;;  %s5340_s4 = inlined_call_operand.hbm [shape: bf16[128,128], index: 4, kind: input, shape index: {}]   ;;  %s5341_s5 = inlined_call_operand.vmem [shape: f32[1,128], index: 5, kind: input, shape index: {}]   ;;  %s5342_s6 = inlined_call_operand.hbm [shape: f32[8,16,128], index: 6, kind: output, shape index: {}]  }
   0x1   :  { %12 = vsyncpa [#allocation10], 0 }
   0x2   :  { %13 = vsyncpa [#allocation13], 0 }
   0x3   :  { %14 = vsyncpa [#allocation8], 0  ;;  %s4539_s21 = smov [#allocation9]   ;;  %s4421_s25 = scalar_lea.hbm %s5337_s1, 512 }
   0x4   :  { %s32_s22 = sshll.u32 %s4539_s21, 4  ;;  %p4422_p0 = scmp.ne.s32.totalorder %s5337_s1, %s4421_s25  ;;  %s33_s22 = int_to_ptr.vmem [resolvable:$true] %s32_s22 }
   0x5   :  { %p4425_p1 = scmp.lt.u32.totalorder %s4421_s25, %s5337_s1 }
   0x7   :  { %p4427_p2 = pnand %p4425_p1, %p4422_p0 }
   0x9   :  { %4430 = shalt.err (!%p4427_p2)
}
   0xa   :  { %s4431_s30 = scalar_lea.vmem %s33_s22, 512  ;;  %p4436_p4 = scmp.lt.s32.totalorder %s33_s22, %s33_s22 }
   0xb   :  { %p4432_p3 = scmp.ne.s32.totalorder %s33_s22, %s4431_s30  ;;  %p4437_p5 = scmp.lt.s32.totalorder %s4431_s30, %s4431_s30 }
   0xd   :  { %p4438_p6 = por %p4437_p5, %p4436_p4 }
   0xf   :  { %p4439_p7 = pnand %p4438_p6, %p4432_p3 }
  0x11   :  { %4442 = shalt.err (!%p4439_p7)
}
  0x12   :  { %s4540_s7 = smov 256   ;;  %s4541_s8 = smov 16  }
  0x13   :  { %38 = dma.hbm_to_vmem [thread:$0]  %s5337_s1, 512, %s33_s22, [#allocation10], %s4540_s7, %s4540_s7, %s4541_s8  }
  0x14   :  { %s4542_s11 = smov [#allocation6]   ;;  %s4443_s15 = scalar_lea.hbm %s5336_s0, 1024 }
  0x15   :  { %s20_s12 = sshll.u32 %s4542_s11, 4  ;;  %p4444_p8 = scmp.ne.s32.totalorder %s5336_s0, %s4443_s15  ;;  %s21_s12 = int_to_ptr.vmem [resolvable:$true] %s20_s12 }
  0x16   :  { %p4447_p9 = scmp.lt.u32.totalorder %s4443_s15, %s5336_s0 }
  0x18   :  { %p4449_p10 = pnand %p4447_p9, %p4444_p8 }
  0x1a   :  { %4452 = shalt.err (!%p4449_p10)
}
  0x1b   :  { %s4453_s20 = scalar_lea.vmem %s21_s12, 1024  ;;  %p4458_p12 = scmp.lt.s32.totalorder %s21_s12, %s21_s12 }
  0x1c   :  { %p4454_p11 = scmp.ne.s32.totalorder %s21_s12, %s4453_s20  ;;  %p4459_p13 = scmp.lt.s32.totalorder %s4453_s20, %s4453_s20 }
  0x1e   :  { %p4460_p0 = por %p4459_p13, %p4458_p12 }
  0x20   :  { %p4461_p1 = pnand %p4460_p0, %p4454_p11 }
  0x22   :  { %4464 = shalt.err (!%p4461_p1)
}
  0x23   :  { %s4543_s1 = smov 64   ;;  %s4544_s21 = smov 4  }
  0x24   :  { %26 = dma.hbm_to_vmem [thread:$0]  %s5336_s0, 1024, %s21_s12, [#allocation7], %s4543_s1, %s4543_s1, %s4544_s21  }
  0x25   :  { %s4545_s24 = smov [#allocation11]   ;;  %s4546_s26 = smov [#allocation12]  }
  0x26   :  { %s44_s25 = sshll.u32 %s4545_s24, 4  ;;  %s58_s27 = sshll.u32 %s4546_s26, 4  ;;  %s45_s25 = int_to_ptr.vmem [resolvable:$true] %s44_s25  ;;  %s4617_s27 = int_to_ptr.vmem [resolvable:$true] %s58_s27 }
  0x27   :  { %s4465_s30 = scalar_lea.hbm %s5338_s2, 4096 }
  0x28   :  { %p4466_p2 = scmp.ne.s32.totalorder %s5338_s2, %s4465_s30  ;;  %p4469_p3 = scmp.lt.u32.totalorder %s4465_s30, %s5338_s2 }
  0x2a   :  { %p4471_p4 = pnand %p4469_p3, %p4466_p2 }
  0x2c   :  { %4474 = shalt.err (!%p4471_p4)
}
  0x2d   :  { %s4475_s0 = scalar_lea.vmem %s45_s25, 4096  ;;  %p4480_p6 = scmp.lt.s32.totalorder %s45_s25, %s45_s25 }
  0x2e   :  { %p4476_p5 = scmp.ne.s32.totalorder %s45_s25, %s4475_s0  ;;  %p4481_p7 = scmp.lt.s32.totalorder %s4475_s0, %s4475_s0 }
  0x30   :  { %p4482_p8 = por %p4481_p7, %p4480_p6 }
  0x32   :  { %p4483_p9 = pnand %p4482_p8, %p4476_p5 }
  0x34   :  { %4486 = shalt.err (!%p4483_p9)
}
  0x35   :  { %50 = dma.hbm_to_vmem [thread:$0]  %s5338_s2, 4096, %s45_s25, [#allocation10], %s4540_s7, %s4540_s7, %s4541_s8  }
  0x36   :  { %s4487_s17 = scalar_lea.hbm %s5340_s4, 1024 }
  0x37   :  { %p4488_p10 = scmp.ne.s32.totalorder %s5340_s4, %s4487_s17  ;;  %p4491_p11 = scmp.lt.u32.totalorder %s4487_s17, %s5340_s4 }
  0x39   :  { %p4493_p12 = pnand %p4491_p11, %p4488_p10 }
  0x3b   :  { %4496 = shalt.err (!%p4493_p12)
}
  0x3c   :  { %s4497_s23 = scalar_lea.vmem %s4617_s27, 1024  ;;  %p4502_p0 = scmp.lt.s32.totalorder %s4617_s27, %s4617_s27 }
  0x3d   :  { %p4498_p13 = scmp.ne.s32.totalorder %s4617_s27, %s4497_s23  ;;  %p4503_p1 = scmp.lt.s32.totalorder %s4497_s23, %s4497_s23 }
  0x3f   :  { %p4504_p2 = por %p4503_p1, %p4502_p0 }
  0x41   :  { %p4505_p3 = pnand %p4504_p2, %p4498_p13 }
  0x43   :  { %4508 = shalt.err (!%p4505_p3)
}
  0x44   :  { %64 = dma.hbm_to_vmem [thread:$0]  %s5340_s4, 1024, %s4617_s27, [#allocation13], %s4543_s1, %s4543_s1, %s4544_s21  }
  0x45   :  { %4531 = dma.done.wait [#allocation7], 1024  }
  0x46   :  { %4532 = vsyncadd [#allocation7], 4294966272 }
  0x47   :  { %4533 = dma.done.wait [#allocation10], 4608  }
  0x48   :  { %4534 = vsyncadd [#allocation10], 4294962688 }
  0x49   :  { %4535 = dma.done.wait [#allocation13], 1024  }
  0x4a   :  { %4536 = vsyncadd [#allocation13], 4294966272  ;;  %v5343_v0 = vmov 0   ;;  %v4023_v1 = vld [vmem:[#allocation9 + $0x4] ss:$16 sps:$4 sm:$0xff]   ;;  %vm190_vm0 = vcmask 130048  }
  0x4b   :  { %287 = vmatprep.mubr.bf16.mxu1 %v5343_v0  ;;  %247 = vmatprep.mubr.bf16.mxu0 %v5343_v0  ;;  %v4025_v2 = vld [vmem:[#allocation9] ss:$16 sps:$4 sm:$0xff]   ;;  %v4027_v4 = vld [vmem:[#allocation9 + $0x8] ss:$16 sps:$4 sm:$0xff]   ;;  %v4029_v5 = vld [vmem:[#allocation9 + $0xc] ss:$16 sps:$4 sm:$0xff]  }
  0x4c   :  { %3880 = vmatprep.subr.bf16.mxu1 %v4023_v1  ;;  %v4656_v3 = vld [vmem:[#allocation6 + $0x20] sm:$0xff]   ;;  %215 = vmatprep.subr.bf16.mxu0 %v4023_v1  ;;  %v4673_v11 = vld [vmem:[#allocation6 + $0x28] sm:$0xff]   ;;  %v4697_v18 = vld [vmem:[#allocation6 + $0x30] sm:$0xff]   ;;  %v4548_v34 = vmov 0.0|0.0  }
  0x4d   :  { %3881 = vmatpush1.bf16.msra.mxu1 %v4025_v2  ;;  %216 = vmatpush1.bf16.msra.mxu0 %v4025_v2  ;;  %v4031_v6 = vld [vmem:[#allocation6] sm:$0xff]   ;;  %v4678_v13 = vld [vmem:[#allocation6 + $0x8] sm:$0xff]   ;;  %v4047_v20 = vld [vmem:[#allocation6 + $0x10] sm:$0xff]  }
  0x4e   :  { %328 = vmatprep.subr.bf16.mxu1 %v4029_v5  ;;  %v4660_v7 = vld [vmem:[#allocation11] ss:$16 sps:$4 sm:$0xff]   ;;  %v4662_v8 = vld [vmem:[#allocation11 + $0x4] ss:$16 sps:$4 sm:$0xff]   ;;  %v4695_v17 = vld [vmem:[#allocation11 + $0xc] ss:$16 sps:$4 sm:$0xff]  }
  0x4f   :  { %710 = vmatprep.subr.bf16.mxu0 %v4662_v8  ;;  %v4667_v9 = vld [vmem:[#allocation11 + $0x20] ss:$16 sps:$4 sm:$0xff]   ;;  %v4670_v10 = vld [vmem:[#allocation11 + $0x24] ss:$16 sps:$4 sm:$0xff]   ;;  %v4717_v24 = vld [vmem:[#allocation6 + $0x38] sm:$0xff]  }
  0x50   :  { %3507 = vmatmul.mubr.msk.bf16.vlgmr.msra.gmra.mrb[0].mxu1 %vm190_vm0, %v4656_v3  ;;  %3503 = vmatmul.mubr.msk.bf16.vlgmr.msra.gmra.mrb[0].mxu0 %vm190_vm0, %v4031_v6  ;;  %v4676_v12 = vld [vmem:[#allocation11 + $0x44] ss:$16 sps:$4 sm:$0xff]   ;;  %v4681_v14 = vld [vmem:[#allocation11 + $0x40] ss:$16 sps:$4 sm:$0xff]   ;;  %v4057_v26 = vld [vmem:[#allocation6 + $0x18] sm:$0xff]  }
  0x51   :  { %329 = vmatpush1.bf16.msra.mxu1 %v4027_v4  ;;  %297 = vmatprep.mubr.bf16.mxu1 %v5343_v0  ;;  %v4686_v15 = vld [vmem:[#allocation11 + $0x64] ss:$16 sps:$4 sm:$0xff]   ;;  %v4692_v16 = vld [vmem:[#allocation11 + $0x60] ss:$16 sps:$4 sm:$0xff]   ;;  %v4734_v30 = vld [vmem:[#allocation11 + $0x8] ss:$16 sps:$4 sm:$0xff]  }
  0x52   :  { %711 = vmatpush1.bf16.msra.mxu0 %v4660_v7  ;;  %257 = vmatprep.mubr.bf16.mxu0 %v5343_v0  ;;  %v4700_v19 = vld [vmem:[#allocation11 + $0x84] ss:$16 sps:$4 sm:$0xff]   ;;  %v4704_v21 = vld [vmem:[#allocation11 + $0x80] ss:$16 sps:$4 sm:$0xff]   ;;  %v4738_v31 = vld [vmem:[#allocation11 + $0x2c] ss:$16 sps:$4 sm:$0xff]  }
  0x53   :  { %712 = vmatprep.subr.bf16.mxu0 %v4670_v10  ;;  %753 = vmatprep.subr.bf16.mxu1 %v4695_v17  ;;  %v4709_v22 = vld [vmem:[#allocation11 + $0xa4] ss:$16 sps:$4 sm:$0xff]   ;;  %v4714_v23 = vld [vmem:[#allocation11 + $0xa0] ss:$16 sps:$4 sm:$0xff]   ;;  %v4741_v32 = vld [vmem:[#allocation11 + $0x28] ss:$16 sps:$4 sm:$0xff]  }
  0x54   :  { %v4720_v25 = vld [vmem:[#allocation11 + $0xc4] ss:$16 sps:$4 sm:$0xff]   ;;  %v4723_v27 = vld [vmem:[#allocation11 + $0xc0] ss:$16 sps:$4 sm:$0xff]   ;;  %v4745_v33 = vld [vmem:[#allocation11 + $0x4c] ss:$16 sps:$4 sm:$0xff]  }
  0x55   :  { %v4728_v28 = vld [vmem:[#allocation11 + $0xe4] ss:$16 sps:$4 sm:$0xff]   ;;  %v4732_v29 = vld [vmem:[#allocation11 + $0xe0] ss:$16 sps:$4 sm:$0xff]   ;;  %v4751_v35 = vld [vmem:[#allocation11 + $0x48] ss:$16 sps:$4 sm:$0xff]  }
  0x56   :  { %713 = vmatpush1.bf16.msra.mxu0 %v4667_v9  ;;  %v4755_v36 = vld [vmem:[#allocation11 + $0x6c] ss:$16 sps:$4 sm:$0xff]   ;;  %v4760_v37 = vld [vmem:[#allocation11 + $0x68] ss:$16 sps:$4 sm:$0xff]  }
  0x57   :  { %714 = vmatprep.subr.bf16.mxu0 %v4676_v12  ;;  %v4765_v38 = vld [vmem:[#allocation11 + $0x8c] ss:$16 sps:$4 sm:$0xff]   ;;  %v4771_v39 = vld [vmem:[#allocation11 + $0x88] ss:$16 sps:$4 sm:$0xff]  }
  0x58   :  { %3508 = vmatmul.mubr.msk.bf16.gmra.mrb[4].mxu1 %vm190_vm0, %v4673_v11  ;;  %3504 = vmatmul.mubr.msk.bf16.gmra.mrb[4].mxu0 %vm190_vm0, %v4678_v13  ;;  %v4774_v40 = vld [vmem:[#allocation11 + $0xac] ss:$16 sps:$4 sm:$0xff]   ;;  %v4784_v41 = vld [vmem:[#allocation11 + $0xa8] ss:$16 sps:$4 sm:$0xff]  }
  0x59   :  { %307 = vmatprep.mubr.bf16.mxu1 %v5343_v0  ;;  %267 = vmatprep.mubr.bf16.mxu0 %v5343_v0  ;;  %v4787_v42 = vld [vmem:[#allocation11 + $0xcc] ss:$16 sps:$4 sm:$0xff]   ;;  %v4792_v43 = vld [vmem:[#allocation11 + $0xc8] ss:$16 sps:$4 sm:$0xff]  }
  0x5a   :  { %715 = vmatpush1.bf16.msra.mxu0 %v4681_v14  ;;  %v4795_v44 = vld [vmem:[#allocation11 + $0xec] ss:$16 sps:$4 sm:$0xff]   ;;  %v4802_v45 = vld [vmem:[#allocation11 + $0xe8] ss:$16 sps:$4 sm:$0xff]  }
  0x5b   :  { %716 = vmatprep.subr.bf16.mxu0 %v4686_v15 }
  0x5e   :  { %717 = vmatpush1.bf16.msra.mxu0 %v4692_v16 }
  0x5f   :  { %718 = vmatprep.subr.bf16.mxu0 %v4700_v19 }
  0x60   :  { %3509 = vmatmul.mubr.msk.bf16.gmra.mrb[8].mxu1 %vm190_vm0, %v4697_v18  ;;  %3505 = vmatmul.mubr.msk.bf16.gmra.mrb[8].mxu0 %vm190_vm0, %v4047_v20 }
  0x61   :  { %317 = vmatprep.mubr.bf16.mxu1 %v5343_v0  ;;  %277 = vmatprep.mubr.bf16.mxu0 %v5343_v0 }
  0x62   :  { %719 = vmatpush1.bf16.msra.mxu0 %v4704_v21 }
  0x63   :  { %720 = vmatprep.subr.bf16.mxu0 %v4709_v22 }
  0x66   :  { %721 = vmatpush1.bf16.msra.mxu0 %v4714_v23 }
  0x67   :  { %722 = vmatprep.subr.bf16.mxu0 %v4720_v25 }
  0x68   :  { %3510 = vmatmul.mubr.msk.bf16.gmra.mrb[12].mxu1 %vm190_vm0, %v4717_v24  ;;  %3506 = vmatmul.mubr.msk.bf16.gmra.mrb[12].mxu0 %vm190_vm0, %v4057_v26 }
  0x69   :  { %360 = vmatprep.mubr.bf16.mxu1 %v5343_v0  ;;  %742 = vmatprep.mubr.bf16.mxu0 %v5343_v0 }
  0x6a   :  { %723 = vmatpush1.bf16.msra.mxu0 %v4723_v27 }
  0x6b   :  { %724 = vmatprep.subr.bf16.mxu0 %v4728_v28 }
  0x6e   :  { %725 = vmatpush1.bf16.msra.mxu0 %v4732_v29 }
  0x6f   :  { %1055 = vmatprep.subr.bf16.mxu0 %v4662_v8 }
  0x70   :  { %3511 = vmatmul.mubr.msk.bf16.vlgmr.msra.gmra.mrb[16].mxu1 %vm190_vm0, %v4031_v6  ;;  %v108_v6 = vld [vmem:[%s5339_s3] sm:$0xf] }
  0x71   :  { %754 = vmatpush1.bf16.msra.mxu1 %v4734_v30  ;;  %370 = vmatprep.mubr.bf16.mxu1 %v5343_v0 }
  0x72   :  { %755 = vmatprep.subr.bf16.mxu1 %v4738_v31  ;;  %743 = vmatmul.mubr.bf16.vlgmr.msra.gmra.mrb[0].mxu0 %v4548_v34 }
  0x73   :  { %1056 = vmatpush1.bf16.msra.mxu0 %v4660_v7  ;;  %1087 = vmatprep.mubr.bf16.mxu0 %v5343_v0 }
  0x74   :  { %1057 = vmatprep.subr.bf16.mxu0 %v4670_v10 }
  0x75   :  { %756 = vmatpush1.bf16.msra.mxu1 %v4741_v32 }
  0x76   :  { %757 = vmatprep.subr.bf16.mxu1 %v4745_v33 }
  0x77   :  { %1058 = vmatpush1.bf16.msra.mxu0 %v4667_v9 }
  0x78   :  { %3512 = vmatmul.mubr.msk.bf16.gmra.mrb[20].mxu1 %vm190_vm0, %v4678_v13  ;;  %1059 = vmatprep.subr.bf16.mxu0 %v4676_v12 }
  0x79   :  { %380 = vmatprep.mubr.bf16.mxu1 %v5343_v0  ;;  %758 = vmatpush1.bf16.msra.mxu1 %v4751_v35 }
  0x7a   :  { %759 = vmatprep.subr.bf16.mxu1 %v4755_v36 }
  0x7b   :  { %1060 = vmatpush1.bf16.msra.mxu0 %v4681_v14 }
  0x7c   :  { %1061 = vmatprep.subr.bf16.mxu0 %v4686_v15 }
  0x7d   :  { %760 = vmatpush1.bf16.msra.mxu1 %v4760_v37 }
  0x7e   :  { %761 = vmatprep.subr.bf16.mxu1 %v4765_v38 }
  0x7f   :  { %1062 = vmatpush1.bf16.msra.mxu0 %v4692_v16 }
  0x80   :  { %3513 = vmatmul.mubr.msk.bf16.gmra.mrb[24].mxu1 %vm190_vm0, %v4047_v20  ;;  %1063 = vmatprep.subr.bf16.mxu0 %v4700_v19 }
  0x81   :  { %390 = vmatprep.mubr.bf16.mxu1 %v5343_v0  ;;  %762 = vmatpush1.bf16.msra.mxu1 %v4771_v39 }
  0x82   :  { %763 = vmatprep.subr.bf16.mxu1 %v4774_v40 }
  0x83   :  { %1064 = vmatpush1.bf16.msra.mxu0 %v4704_v21 }
  0x84   :  { %1065 = vmatprep.subr.bf16.mxu0 %v4709_v22 }
  0x85   :  { %764 = vmatpush1.bf16.msra.mxu1 %v4784_v41 }
  0x86   :  { %765 = vmatprep.subr.bf16.mxu1 %v4787_v42 }
  0x87   :  { %1066 = vmatpush1.bf16.msra.mxu0 %v4714_v23 }
  0x88   :  { %3514 = vmatmul.mubr.msk.bf16.gmra.mrb[28].mxu1 %vm190_vm0, %v4057_v26  ;;  %1067 = vmatprep.subr.bf16.mxu0 %v4720_v25 }
  0x89   :  { %400 = vmatprep.mubr.bf16.mxu1 %v5343_v0  ;;  %766 = vmatpush1.bf16.msra.mxu1 %v4792_v43 }
  0x8a   :  { %767 = vmatprep.subr.bf16.mxu1 %v4795_v44 }
  0x8b   :  { %1068 = vmatpush1.bf16.msra.mxu0 %v4723_v27 }
  0x8c   :  { %1069 = vmatprep.subr.bf16.mxu0 %v4728_v28 }
  0x8d   :  { %768 = vmatpush1.bf16.msra.mxu1 %v4802_v45 }
  0x8e   :  { %1098 = vmatprep.subr.bf16.mxu1 %v4695_v17 }
  0x8f   :  { %1070 = vmatpush1.bf16.msra.mxu0 %v4732_v29 }
  0x90   :  { %3515 = vmatmul.mubr.msk.bf16.gmra.mrb[32].mxu1 %vm190_vm0, %v4656_v3  ;;  %1401 = vmatprep.subr.bf16.mxu0 %v4662_v8  ;;  %v110_v3 = vlaneseq }
  0x91   :  { %410 = vmatprep.mubr.bf16.mxu1 %v5343_v0 }
  0x92   :  { %v111_v4 = vshrl.u32 %v110_v3, 7 }
  0x94   :  { %v112_v5 = vsub.s32 0, %v111_v4  ;;  %v116_v8 = vsub.s32 1, %v111_v4 }
  0x96   :  { %v4877_v13 = vrot.slane %v108_v6, %v116_v8 }
  0x98   :  { %3516 = vmatmul.mubr.msk.bf16.gmra.mrb[36].mxu1 %vm190_vm0, %v4673_v11  ;;  %v4875_v11 = vrot.slane %v108_v6, %v112_v5 }
  0x99   :  { %420 = vmatprep.mubr.bf16.mxu1 %v5343_v0 }
  0xa0   :  { %3517 = vmatmul.mubr.msk.bf16.gmra.mrb[40].mxu1 %vm190_vm0, %v4697_v18 }
  0xa1   :  { %430 = vmatprep.mubr.bf16.mxu1 %v5343_v0 }
  0xa8   :  { %3518 = vmatmul.mubr.msk.bf16.gmra.mrb[44].mxu1 %vm190_vm0, %v4717_v24 }
  0xa9   :  { %785 = vmatprep.mubr.bf16.mxu1 %v5343_v0 }
  0xb0   :  { %786 = vmatmul.mubr.bf16.vlgmr.msra.gmra.mrb[16].mxu1 %v4548_v34 }
  0xb1   :  { %1099 = vmatpush1.bf16.msra.mxu1 %v4734_v30  ;;  %1130 = vmatprep.mubr.bf16.mxu1 %v5343_v0 }
  0xb2   :  { %1100 = vmatprep.subr.bf16.mxu1 %v4738_v31 }
  0xb5   :  { %1101 = vmatpush1.bf16.msra.mxu1 %v4741_v32 }
  0xb6   :  { %1102 = vmatprep.subr.bf16.mxu1 %v4745_v33 }
  0xb9   :  { %1103 = vmatpush1.bf16.msra.mxu1 %v4751_v35 }
  0xba   :  { %1104 = vmatprep.subr.bf16.mxu1 %v4755_v36 }
  0xbd   :  { %1105 = vmatpush1.bf16.msra.mxu1 %v4760_v37 }
  0xbe   :  { %1106 = vmatprep.subr.bf16.mxu1 %v4765_v38 }
  0xc1   :  { %1107 = vmatpush1.bf16.msra.mxu1 %v4771_v39 }
  0xc2   :  { %1108 = vmatprep.subr.bf16.mxu1 %v4774_v40 }
  0xc5   :  { %1109 = vmatpush1.bf16.msra.mxu1 %v4784_v41 }
  0xc6   :  { %1110 = vmatprep.subr.bf16.mxu1 %v4787_v42 }
  0xc9   :  { %1111 = vmatpush1.bf16.msra.mxu1 %v4792_v43 }
  0xca   :  { %1112 = vmatprep.subr.bf16.mxu1 %v4795_v44 }
  0xcd   :  { %1113 = vmatpush1.bf16.msra.mxu1 %v4802_v45 }
  0xce   :  { %1444 = vmatprep.subr.bf16.mxu1 %v4695_v17 }
 0x123   :  { %v4840_v46 = vpop.f32.mrb[0].mxu1 }
 0x124   :  { %v4842_v47 = vpop.f32.mrb[1].mxu1 }
 0x125   :  { %v4844_v48 = vpop.f32.mrb[2].mxu1 }
 0x126   :  { %v4846_v49 = vpop.f32.mrb[3].mxu1 }
 0x12b   :  { %v4848_v50 = vpop.f32.mrb[4].mxu1 }
 0x12c   :  { %v4850_v51 = vpop.f32.mrb[5].mxu1 }
 0x12d   :  { %v4852_v52 = vpop.f32.mrb[6].mxu1 }
 0x12e   :  { %5348 = vst [vmem:[#allocation19_spill] sm:$0xff] %v4852_v52  ;;  %v4854_v53 = vpop.f32.mrb[7].mxu1 }
 0x12f   :  { %5349 = vst [vmem:[#allocation20_spill] sm:$0xff] %v4854_v53 }
 0x133   :  { %v4856_v54 = vpop.f32.mrb[8].mxu1 }
 0x134   :  { %5350 = vst [vmem:[#allocation21_spill] sm:$0xff] %v4856_v54  ;;  %v4858_v55 = vpop.f32.mrb[9].mxu1 }
 0x135   :  { %5351 = vst [vmem:[#allocation22_spill] sm:$0xff] %v4858_v55  ;;  %v4860_v56 = vpop.f32.mrb[10].mxu1 }
 0x136   :  { %5352 = vst [vmem:[#allocation23_spill] sm:$0xff] %v4860_v56  ;;  %v4862_v57 = vpop.f32.mrb[11].mxu1 }
 0x137   :  { %5353 = vst [vmem:[#allocation24_spill] sm:$0xff] %v4862_v57 }
 0x13b   :  { %v4864_v58 = vpop.f32.mrb[12].mxu1 }
 0x13c   :  { %5354 = vst [vmem:[#allocation25_spill] sm:$0xff] %v4864_v58  ;;  %v4866_v59 = vpop.f32.mrb[13].mxu1 }
 0x13d   :  { %5355 = vst [vmem:[#allocation26_spill] sm:$0xff] %v4866_v59  ;;  %v4868_v60 = vpop.f32.mrb[14].mxu1  ;;  %v124_v59 = vsub.s32 3, %v111_v4 }
 0x13e   :  { %5356 = vst [vmem:[#allocation27_spill] sm:$0xff] %v4868_v60  ;;  %v4870_v61 = vpop.f32.mrb[15].mxu1  ;;  %v120_v60 = vsub.s32 2, %v111_v4 }
 0x13f   :  { %5357 = vst [vmem:[#allocation28_spill] sm:$0xff] %v4870_v61 }
 0x140   :  { %v4883_v56 = vrot.slane %v108_v6, %v120_v60 }
 0x145   :  { %v744_v62 = vpop.f32.mrb[0].mxu0 }
 0x146   :  { %v746_v63 = vpop.f32.mrb[1].mxu0  ;;  %v3882_v18 = vadd.f32 %v744_v62, %v4875_v11 }
 0x147   :  { %v748_v1 = vpop.f32.mrb[2].mxu0  ;;  %v3883_v20 = vadd.f32 %v746_v63, %v4877_v13 }
 0x148   :  { %v750_v2 = vpop.f32.mrb[3].mxu0  ;;  %v3551_v26 = vmul.f32 -1.442695, %v3882_v18  ;;  %v3884_v34 = vadd.f32 %v748_v1, %v4875_v11  ;;  %v4885_v18 = vrot.slane %v108_v6, %v124_v59 }
 0x149   :  { %v3885_v24 = vadd.f32 %v750_v2, %v4877_v13  ;;  %v3553_v3 = vmul.f32 -1.442695, %v3883_v20 }
 0x14a   :  { %4165 = vpow2.f32 %v3551_v26  ;;  %v3552_v61 = vmul.f32 -1.442695, %v3884_v34 }
 0x14b   :  { %v3554_v0 = vmul.f32 -1.442695, %v3885_v24  ;;  %4167 = vpow2.f32 %v3553_v3 }
 0x14d   :  { %4169 = vpow2.f32 %v3554_v0 }
 0x14e   :  { %4171 = vpow2.f32 %v3552_v61 }
 0x154   :  { %v4166_v5 = vpop.eup %4165 }
 0x155   :  { %v4168_v8 = vpop.eup %4167  ;;  %v810_v62 = vadd.f32 1.0, %v4166_v5 }
 0x156   :  { %v822_v63 = vadd.f32 1.0, %v4168_v8 }
 0x157   :  { %v4170_v58 = vpop.eup %4169  ;;  %4173 = vrcp.f32 %v810_v62 }
 0x158   :  { %v4172_v57 = vpop.eup %4171  ;;  %v823_v2 = vadd.f32 1.0, %v4170_v58  ;;  %4175 = vrcp.f32 %v822_v63 }
 0x159   :  { %v811_v1 = vadd.f32 1.0, %v4172_v57 }
 0x15a   :  { %4177 = vrcp.f32 %v823_v2 }
 0x161   :  { %v4174_v59 = vpop.eup %4173 }
 0x162   :  { %v4176_v6 = vpop.eup %4175 }
 0x163   :  { %v842_v62 = vmul.f32 0.0, %v4176_v6 }
 0x164   :  { %v4178_v3 = vpop.eup %4177 }
 0x183   :  { %v787_v20 = vpop.f32.mrb[16].mxu1 }
 0x184   :  { %v3930_v0 = vadd.f32 %v787_v20, %v4883_v56  ;;  %v789_v61 = vpop.f32.mrb[17].mxu1 }
 0x185   :  { %v3931_v24 = vadd.f32 %v789_v61, %v4885_v18  ;;  %v791_v4 = vpop.f32.mrb[18].mxu1 }
 0x186   :  { %4179 = vtanh.f32 %v3930_v0  ;;  %v3932_v26 = vadd.f32 %v791_v4, %v4883_v56  ;;  %v793_v34 = vpop.f32.mrb[19].mxu1  ;;  %v843_v0 = vmul.f32 0.0, %v4178_v3 }
 0x187   :  { %4181 = vrcp.f32 %v811_v1  ;;  %v3555_v60 = vmul.f32 -1.442695, %v3931_v24  ;;  %v3933_v58 = vadd.f32 %v793_v34, %v4885_v18 }
 0x188   :  { %4183 = vtanh.f32 %v3932_v26 }
 0x189   :  { %4185 = vpow2.f32 %v3555_v60  ;;  %v3556_v57 = vmul.f32 -1.442695, %v3933_v58 }
 0x18b   :  { %4187 = vpow2.f32 %v3556_v57 }
 0x190   :  { %v4180_v5 = vpop.eup %4179 }
 0x191   :  { %v4182_v8 = vpop.eup %4181  ;;  %v844_v63 = vmul.f32 %v4180_v5, %v4174_v59 }
 0x192   :  { %v4184_v2 = vpop.eup %4183 }
 0x193   :  { %v4186_v20 = vpop.eup %4185  ;;  %v4891_v61 = vadd.f32 %v844_v63, %v842_v62  ;;  %v845_v1 = vmul.f32 %v4184_v2, %v4182_v8  ;;  %v5359_v8 = vmov 0  }
 0x194   :  { %v836_v24 = vadd.f32 1.0, %v4186_v20 }
 0x195   :  { %v4188_v4 = vpop.eup %4187  ;;  %4189 = vtanh.f32 %v4891_v61  ;;  %v4894_v26 = vadd.f32 %v845_v1, %v843_v0 }
 0x196   :  { %4191 = vrcp.f32 %v836_v24  ;;  %v837_v34 = vadd.f32 1.0, %v4188_v4 }
 0x197   :  { %4193 = vtanh.f32 %v4894_v26 }
 0x198   :  { %4195 = vrcp.f32 %v837_v34 }
 0x19f   :  { %v4190_v60 = vpop.eup %4189 }
 0x1a0   :  { %v4192_v58 = vpop.eup %4191 }
 0x1a1   :  { %v4194_v57 = vpop.eup %4193  ;;  %v850_v6 = vmul.f32 %v4192_v58, %v4190_v60 }
 0x1a2   :  { %v4196_v59 = vpop.eup %4195 }
 0x1a3   :  { %v851_v3 = vmul.f32 %v4196_v59, %v4194_v57 }
 0x1a5   :  { %v4897_v5 = vpack.c.bf16 %v851_v3, %v850_v6 }
 0x1a7   :  { %5358 = vst [vmem:[#allocation29_spill] sm:$0xff] %v4897_v5  ;;  %1088 = vmatmul.mubr.bf16.vlgmr.msra.gmra.mrb[4].mxu0 %v4897_v5  ;;  %1131 = vmatmul.mubr.bf16.vlgmr.msra.gmra.mrb[20].mxu1 %v4897_v5 }
 0x1a8   :  { %1402 = vmatpush1.bf16.msra.mxu0 %v4660_v7  ;;  %1445 = vmatpush1.bf16.msra.mxu1 %v4734_v30 }
 0x1a9   :  { %1403 = vmatprep.subr.bf16.mxu0 %v4670_v10  ;;  %1446 = vmatprep.subr.bf16.mxu1 %v4738_v31 }
 0x1aa   :  { %1433 = vmatprep.mubr.bf16.mxu0 %v5359_v8  ;;  %1476 = vmatprep.mubr.bf16.mxu1 %v5359_v8 }
 0x1ac   :  { %1404 = vmatpush1.bf16.msra.mxu0 %v4667_v9  ;;  %1447 = vmatpush1.bf16.msra.mxu1 %v4741_v32 }
 0x1ad   :  { %1405 = vmatprep.subr.bf16.mxu0 %v4676_v12  ;;  %1448 = vmatprep.subr.bf16.mxu1 %v4745_v33 }
 0x1b0   :  { %1406 = vmatpush1.bf16.msra.mxu0 %v4681_v14  ;;  %1449 = vmatpush1.bf16.msra.mxu1 %v4751_v35 }
 0x1b1   :  { %1407 = vmatprep.subr.bf16.mxu0 %v4686_v15  ;;  %1450 = vmatprep.subr.bf16.mxu1 %v4755_v36 }
 0x1b4   :  { %1408 = vmatpush1.bf16.msra.mxu0 %v4692_v16  ;;  %1451 = vmatpush1.bf16.msra.mxu1 %v4760_v37 }
 0x1b5   :  { %1409 = vmatprep.subr.bf16.mxu0 %v4700_v19  ;;  %1452 = vmatprep.subr.bf16.mxu1 %v4765_v38 }
 0x1b8   :  { %1410 = vmatpush1.bf16.msra.mxu0 %v4704_v21  ;;  %1453 = vmatpush1.bf16.msra.mxu1 %v4771_v39 }
 0x1b9   :  { %1411 = vmatprep.subr.bf16.mxu0 %v4709_v22  ;;  %1454 = vmatprep.subr.bf16.mxu1 %v4774_v40 }
 0x1bc   :  { %1412 = vmatpush1.bf16.msra.mxu0 %v4714_v23  ;;  %1455 = vmatpush1.bf16.msra.mxu1 %v4784_v41 }
 0x1bd   :  { %1413 = vmatprep.subr.bf16.mxu0 %v4720_v25  ;;  %1456 = vmatprep.subr.bf16.mxu1 %v4787_v42 }
 0x1c0   :  { %1414 = vmatpush1.bf16.msra.mxu0 %v4723_v27  ;;  %1457 = vmatpush1.bf16.msra.mxu1 %v4792_v43 }
 0x1c1   :  { %1415 = vmatprep.subr.bf16.mxu0 %v4728_v28  ;;  %1458 = vmatprep.subr.bf16.mxu1 %v4795_v44 }
 0x1c4   :  { %1416 = vmatpush1.bf16.msra.mxu0 %v4732_v29  ;;  %1459 = vmatpush1.bf16.msra.mxu1 %v4802_v45 }
 0x1c5   :  { %1790 = vmatprep.subr.bf16.mxu1 %v4695_v17 }
 0x27a   :  { %v1089_v7 = vpop.f32.mrb[4].mxu0  ;;  %v1132_v9 = vpop.f32.mrb[20].mxu1 }
 0x27b   :  { %v3886_v10 = vadd.f32 %v1089_v7, %v4875_v11  ;;  %v1091_v12 = vpop.f32.mrb[5].mxu0  ;;  %v1134_v14 = vpop.f32.mrb[21].mxu1  ;;  %v3934_v63 = vadd.f32 %v1132_v9, %v4883_v56 }
 0x27c   :  { %v3887_v15 = vadd.f32 %v1091_v12, %v4877_v13  ;;  %v1093_v16 = vpop.f32.mrb[6].mxu0  ;;  %v1136_v19 = vpop.f32.mrb[22].mxu1  ;;  %v3935_v62 = vadd.f32 %v1134_v14, %v4885_v18 }
 0x27d   :  { %v3589_v21 = vmul.f32 -1.442695, %v3886_v10  ;;  %v3888_v22 = vadd.f32 %v1093_v16, %v4875_v11  ;;  %v1095_v23 = vpop.f32.mrb[7].mxu0  ;;  %v1138_v25 = vpop.f32.mrb[23].mxu1  ;;  %v3936_v0 = vadd.f32 %v1136_v19, %v4883_v56 }
 0x27e   :  { %v3591_v27 = vmul.f32 -1.442695, %v3887_v15  ;;  %v3889_v28 = vadd.f32 %v1095_v23, %v4877_v13  ;;  %v3593_v2 = vmul.f32 -1.442695, %v3935_v62  ;;  %v3937_v20 = vadd.f32 %v1138_v25, %v4885_v18 }
 0x27f   :  { %4197 = vpow2.f32 %v3589_v21  ;;  %v3590_v17 = vmul.f32 -1.442695, %v3888_v22 }
 0x280   :  { %4199 = vpow2.f32 %v3591_v27  ;;  %v3592_v29 = vmul.f32 -1.442695, %v3889_v28  ;;  %v3594_v34 = vmul.f32 -1.442695, %v3937_v20 }
 0x281   :  { %4201 = vpow2.f32 %v3590_v17 }
 0x282   :  { %4203 = vpow2.f32 %v3592_v29 }
 0x283   :  { %4205 = vtanh.f32 %v3934_v63 }
 0x284   :  { %4207 = vpow2.f32 %v3593_v2 }
 0x285   :  { %4209 = vtanh.f32 %v3936_v0 }
 0x289   :  { %v4198_v1 = vpop.eup %4197 }
 0x28a   :  { %v4200_v24 = vpop.eup %4199  ;;  %v1155_v4 = vadd.f32 1.0, %v4198_v1 }
 0x28b   :  { %v1167_v60 = vadd.f32 1.0, %v4200_v24  ;;  %v4202_v58 = vpop.eup %4201 }
 0x28c   :  { %4211 = vrcp.f32 %v1155_v4  ;;  %v1156_v57 = vadd.f32 1.0, %v4202_v58  ;;  %v4204_v59 = vpop.eup %4203 }
 0x28d   :  { %4213 = vrcp.f32 %v1167_v60  ;;  %v1168_v6 = vadd.f32 1.0, %v4204_v59  ;;  %v4206_v3 = vpop.eup %4205 }
 0x28e   :  { %4215 = vpow2.f32 %v3594_v34  ;;  %v4208_v7 = vpop.eup %4207 }
 0x28f   :  { %4217 = vrcp.f32 %v1156_v57  ;;  %v4210_v9 = vpop.eup %4209  ;;  %v1181_v21 = vadd.f32 1.0, %v4208_v7 }
 0x290   :  { %4219 = vrcp.f32 %v1168_v6 }
 0x291   :  { %4221 = vrcp.f32 %v1181_v21 }
 0x296   :  { %v4212_v10 = vpop.eup %4211 }
 0x297   :  { %v4214_v12 = vpop.eup %4213  ;;  %v1189_v14 = vmul.f32 %v4212_v10, %v4206_v3 }
 0x298   :  { %v4216_v15 = vpop.eup %4215  ;;  %v1187_v16 = vmul.f32 %v4214_v12, %v4891_v61 }
 0x299   :  { %v4218_v19 = vpop.eup %4217  ;;  %v1182_v27 = vadd.f32 1.0, %v4216_v15 }
 0x29a   :  { %v4943_v22 = vadd.f32 %v1189_v14, %v1187_v16  ;;  %v1190_v23 = vmul.f32 %v4218_v19, %v4210_v9  ;;  %v4220_v25 = vpop.eup %4219 }
 0x29b   :  { %v1188_v28 = vmul.f32 %v4220_v25, %v4894_v26  ;;  %v4222_v29 = vpop.eup %4221  ;;  %v5015_v26 = vld [vmem:[#allocation11 + $0xe0] ss:$16 sps:$4 sm:$0xff]  }
 0x29c   :  { %4223 = vtanh.f32 %v4943_v22 }
 0x29d   :  { %v4947_v17 = vadd.f32 %v1190_v23, %v1188_v28  ;;  %4225 = vrcp.f32 %v1182_v27 }
 0x29f   :  { %4227 = vtanh.f32 %v4947_v17 }
 0x2a6   :  { %v4224_v62 = vpop.eup %4223 }
 0x2a7   :  { %v4226_v61 = vpop.eup %4225  ;;  %v1195_v2 = vmul.f32 %v4224_v62, %v4222_v29 }
 0x2a9   :  { %v4228_v63 = vpop.eup %4227 }
 0x2aa   :  { %v1196_v20 = vmul.f32 %v4228_v63, %v4226_v61 }
 0x2ac   :  { %v4950_v0 = vpack.c.bf16 %v1196_v20, %v1195_v2 }
 0x2ae   :  { %5360 = vst [vmem:[#allocation30_spill] sm:$0xff] %v4950_v0  ;;  %1434 = vmatmul.mubr.bf16.vlgmr.msra.gmra.mrb[8].mxu0 %v4950_v0  ;;  %1477 = vmatmul.mubr.bf16.vlgmr.msra.gmra.mrb[24].mxu1 %v4950_v0 }
 0x2af   :  { %1791 = vmatpush1.bf16.msra.mxu1 %v4734_v30  ;;  %1779 = vmatprep.mubr.bf16.mxu0 %v5359_v8  ;;  %v4971_v30 = vld [vmem:[#allocation11 + $0x4] ss:$16 sps:$4 sm:$0xff]  }
 0x2b0   :  { %1792 = vmatprep.subr.bf16.mxu1 %v4738_v31  ;;  %1822 = vmatprep.mubr.bf16.mxu1 %v5359_v8  ;;  %v4973_v31 = vld [vmem:[#allocation11] ss:$16 sps:$4 sm:$0xff]  }
 0x2b1   :  { %1747 = vmatprep.subr.bf16.mxu0 %v4971_v30 }
 0x2b2   :  { %1748 = vmatpush1.bf16.msra.mxu0 %v4973_v31 }
 0x2b3   :  { %1793 = vmatpush1.bf16.msra.mxu1 %v4741_v32  ;;  %v4977_v32 = vld [vmem:[#allocation11 + $0x24] ss:$16 sps:$4 sm:$0xff]  }
 0x2b4   :  { %1794 = vmatprep.subr.bf16.mxu1 %v4745_v33  ;;  %v4979_v33 = vld [vmem:[#allocation11 + $0x20] ss:$16 sps:$4 sm:$0xff]   ;;  %1749 = vmatprep.subr.bf16.mxu0 %v4977_v32 }
 0x2b6   :  { %1750 = vmatpush1.bf16.msra.mxu0 %v4979_v33 }
 0x2b7   :  { %1795 = vmatpush1.bf16.msra.mxu1 %v4751_v35  ;;  %v4983_v35 = vld [vmem:[#allocation11 + $0x44] ss:$16 sps:$4 sm:$0xff]  }
 0x2b8   :  { %1796 = vmatprep.subr.bf16.mxu1 %v4755_v36  ;;  %v4985_v36 = vld [vmem:[#allocation11 + $0x40] ss:$16 sps:$4 sm:$0xff]   ;;  %1751 = vmatprep.subr.bf16.mxu0 %v4983_v35 }
 0x2ba   :  { %1752 = vmatpush1.bf16.msra.mxu0 %v4985_v36 }
 0x2bb   :  { %1797 = vmatpush1.bf16.msra.mxu1 %v4760_v37  ;;  %v4989_v37 = vld [vmem:[#allocation11 + $0x64] ss:$16 sps:$4 sm:$0xff]  }
 0x2bc   :  { %1798 = vmatprep.subr.bf16.mxu1 %v4765_v38  ;;  %v4991_v38 = vld [vmem:[#allocation11 + $0x60] ss:$16 sps:$4 sm:$0xff]   ;;  %1753 = vmatprep.subr.bf16.mxu0 %v4989_v37 }
 0x2be   :  { %1754 = vmatpush1.bf16.msra.mxu0 %v4991_v38 }
 0x2bf   :  { %1799 = vmatpush1.bf16.msra.mxu1 %v4771_v39  ;;  %v4995_v39 = vld [vmem:[#allocation11 + $0x84] ss:$16 sps:$4 sm:$0xff]  }
 0x2c0   :  { %1800 = vmatprep.subr.bf16.mxu1 %v4774_v40  ;;  %v4997_v40 = vld [vmem:[#allocation11 + $0x80] ss:$16 sps:$4 sm:$0xff]   ;;  %1755 = vmatprep.subr.bf16.mxu0 %v4995_v39 }
 0x2c2   :  { %1756 = vmatpush1.bf16.msra.mxu0 %v4997_v40 }
 0x2c3   :  { %1801 = vmatpush1.bf16.msra.mxu1 %v4784_v41  ;;  %v4999_v41 = vld [vmem:[#allocation11 + $0xa4] ss:$16 sps:$4 sm:$0xff]  }
 0x2c4   :  { %1802 = vmatprep.subr.bf16.mxu1 %v4787_v42  ;;  %v5003_v42 = vld [vmem:[#allocation11 + $0xa0] ss:$16 sps:$4 sm:$0xff]   ;;  %1757 = vmatprep.subr.bf16.mxu0 %v4999_v41 }
 0x2c6   :  { %1758 = vmatpush1.bf16.msra.mxu0 %v5003_v42 }
 0x2c7   :  { %1803 = vmatpush1.bf16.msra.mxu1 %v4792_v43  ;;  %v5006_v43 = vld [vmem:[#allocation11 + $0xc4] ss:$16 sps:$4 sm:$0xff]  }
 0x2c8   :  { %1804 = vmatprep.subr.bf16.mxu1 %v4795_v44  ;;  %v5009_v44 = vld [vmem:[#allocation11 + $0xc0] ss:$16 sps:$4 sm:$0xff]   ;;  %1759 = vmatprep.subr.bf16.mxu0 %v5006_v43 }
 0x2ca   :  { %1760 = vmatpush1.bf16.msra.mxu0 %v5009_v44 }
 0x2cb   :  { %1805 = vmatpush1.bf16.msra.mxu1 %v4802_v45  ;;  %v5012_v45 = vld [vmem:[#allocation11 + $0xe4] ss:$16 sps:$4 sm:$0xff]  }
 0x2cc   :  { %1761 = vmatprep.subr.bf16.mxu0 %v5012_v45 }
 0x2ce   :  { %1762 = vmatpush1.bf16.msra.mxu0 %v5015_v26 }
 0x2cf   :  { %2093 = vmatprep.subr.bf16.mxu0 %v4971_v30 }
 0x381   :  { %v1435_v1 = vpop.f32.mrb[8].mxu0  ;;  %v1478_v24 = vpop.f32.mrb[24].mxu1 }
 0x382   :  { %v3890_v4 = vadd.f32 %v1435_v1, %v4875_v11  ;;  %v1437_v34 = vpop.f32.mrb[9].mxu0  ;;  %v1480_v60 = vpop.f32.mrb[25].mxu1  ;;  %v3938_v19 = vadd.f32 %v1478_v24, %v4883_v56 }
 0x383   :  { %v3891_v58 = vadd.f32 %v1437_v34, %v4877_v13  ;;  %v1439_v57 = vpop.f32.mrb[10].mxu0  ;;  %v1482_v59 = vpop.f32.mrb[26].mxu1  ;;  %v3939_v16 = vadd.f32 %v1480_v60, %v4885_v18 }
 0x384   :  { %v3627_v6 = vmul.f32 -1.442695, %v3890_v4  ;;  %v3892_v3 = vadd.f32 %v1439_v57, %v4875_v11  ;;  %v1441_v7 = vpop.f32.mrb[11].mxu0  ;;  %v1484_v9 = vpop.f32.mrb[27].mxu1  ;;  %v3940_v25 = vadd.f32 %v1482_v59, %v4883_v56 }
 0x385   :  { %v3629_v10 = vmul.f32 -1.442695, %v3891_v58  ;;  %v3893_v12 = vadd.f32 %v1441_v7, %v4877_v13  ;;  %v3631_v21 = vmul.f32 -1.442695, %v3939_v16  ;;  %v3941_v23 = vadd.f32 %v1484_v9, %v4885_v18 }
 0x386   :  { %4229 = vpow2.f32 %v3627_v6  ;;  %v3628_v14 = vmul.f32 -1.442695, %v3892_v3 }
 0x387   :  { %4231 = vpow2.f32 %v3629_v10  ;;  %v3630_v15 = vmul.f32 -1.442695, %v3893_v12  ;;  %v3632_v62 = vmul.f32 -1.442695, %v3941_v23 }
 0x388   :  { %4233 = vpow2.f32 %v3628_v14 }
 0x389   :  { %4235 = vpow2.f32 %v3630_v15 }
 0x38a   :  { %4237 = vtanh.f32 %v3938_v19 }
 0x38b   :  { %4239 = vpow2.f32 %v3631_v21 }
 0x38c   :  { %4241 = vtanh.f32 %v3940_v25 }
 0x390   :  { %v4230_v27 = vpop.eup %4229 }
 0x391   :  { %v4232_v28 = vpop.eup %4231  ;;  %v1501_v29 = vadd.f32 1.0, %v4230_v27 }
 0x392   :  { %v1513_v61 = vadd.f32 1.0, %v4232_v28  ;;  %v4234_v63 = vpop.eup %4233 }
 0x393   :  { %4243 = vrcp.f32 %v1501_v29  ;;  %v1502_v2 = vadd.f32 1.0, %v4234_v63  ;;  %v4236_v20 = vpop.eup %4235  ;;  %v5060_v29 = vld [vmem:[#allocation11 + $0x8] ss:$16 sps:$4 sm:$0xff]   ;;  %v5070_v63 = vld [vmem:[#allocation11 + $0x4c] ss:$16 sps:$4 sm:$0xff]  }
 0x394   :  { %4245 = vrcp.f32 %v1513_v61  ;;  %v1514_v1 = vadd.f32 1.0, %v4236_v20  ;;  %v4238_v24 = vpop.eup %4237  ;;  %v5066_v61 = vld [vmem:[#allocation11 + $0x28] ss:$16 sps:$4 sm:$0xff]   ;;  %v5076_v20 = vld [vmem:[#allocation11 + $0x6c] ss:$16 sps:$4 sm:$0xff]  }
 0x395   :  { %4247 = vpow2.f32 %v3632_v62  ;;  %v4240_v4 = vpop.eup %4239  ;;  %v5064_v62 = vld [vmem:[#allocation11 + $0x2c] ss:$16 sps:$4 sm:$0xff]  }
 0x396   :  { %4249 = vrcp.f32 %v1502_v2  ;;  %v4242_v34 = vpop.eup %4241  ;;  %v1527_v7 = vadd.f32 1.0, %v4240_v4  ;;  %v5072_v2 = vld [vmem:[#allocation11 + $0x48] ss:$16 sps:$4 sm:$0xff]  }
 0x397   :  { %4251 = vrcp.f32 %v1514_v1  ;;  %v5078_v1 = vld [vmem:[#allocation11 + $0x68] ss:$16 sps:$4 sm:$0xff]  }
 0x398   :  { %4253 = vrcp.f32 %v1527_v7  ;;  %v5084_v4 = vld [vmem:[#allocation11 + $0x88] ss:$16 sps:$4 sm:$0xff]  }
 0x39d   :  { %v4244_v60 = vpop.eup %4243 }
 0x39e   :  { %v4246_v58 = vpop.eup %4245  ;;  %v1535_v57 = vmul.f32 %v4244_v60, %v4238_v24  ;;  %v5082_v24 = vld [vmem:[#allocation11 + $0x8c] ss:$16 sps:$4 sm:$0xff]   ;;  %v5090_v60 = vld [vmem:[#allocation11 + $0xa8] ss:$16 sps:$4 sm:$0xff]  }
 0x39f   :  { %v4248_v59 = vpop.eup %4247  ;;  %v1533_v6 = vmul.f32 %v4246_v58, %v4943_v22  ;;  %v5093_v58 = vld [vmem:[#allocation11 + $0xcc] ss:$16 sps:$4 sm:$0xff]  }
 0x3a0   :  { %v4250_v3 = vpop.eup %4249  ;;  %v1528_v14 = vadd.f32 1.0, %v4248_v59  ;;  %v5099_v59 = vld [vmem:[#allocation11 + $0xec] ss:$16 sps:$4 sm:$0xff]  }
 0x3a1   :  { %v5029_v9 = vadd.f32 %v1535_v57, %v1533_v6  ;;  %v1536_v10 = vmul.f32 %v4250_v3, %v4242_v34  ;;  %v4252_v12 = vpop.eup %4251  ;;  %v5086_v34 = vld [vmem:[#allocation11 + $0xac] ss:$16 sps:$4 sm:$0xff]   ;;  %v5096_v57 = vld [vmem:[#allocation11 + $0xc8] ss:$16 sps:$4 sm:$0xff]  }
 0x3a2   :  { %v1534_v15 = vmul.f32 %v4252_v12, %v4947_v17  ;;  %v4254_v19 = vpop.eup %4253  ;;  %v5058_v17 = vld [vmem:[#allocation11 + $0xc] ss:$16 sps:$4 sm:$0xff]   ;;  %v5102_v6 = vld [vmem:[#allocation11 + $0xe8] ss:$16 sps:$4 sm:$0xff]  }
 0x3a3   :  { %4255 = vtanh.f32 %v5029_v9  ;;  %2136 = vmatprep.subr.bf16.mxu1 %v5058_v17 }
 0x3a4   :  { %v5033_v16 = vadd.f32 %v1536_v10, %v1534_v15  ;;  %4257 = vrcp.f32 %v1528_v14 }
 0x3a6   :  { %4259 = vtanh.f32 %v5033_v16 }
 0x3ad   :  { %v4256_v21 = vpop.eup %4255 }
 0x3ae   :  { %v4258_v22 = vpop.eup %4257  ;;  %v1541_v25 = vmul.f32 %v4256_v21, %v4254_v19 }
 0x3b0   :  { %v4260_v23 = vpop.eup %4259 }
 0x3b1   :  { %v1542_v27 = vmul.f32 %v4260_v23, %v4258_v22 }
 0x3b3   :  { %v5036_v28 = vpack.c.bf16 %v1542_v27, %v1541_v25 }
 0x3b5   :  { %5361 = vst [vmem:[#allocation31_spill] sm:$0xff] %v5036_v28  ;;  %1780 = vmatmul.mubr.bf16.vlgmr.msra.gmra.mrb[12].mxu0 %v5036_v28  ;;  %1823 = vmatmul.mubr.bf16.vlgmr.msra.gmra.mrb[28].mxu1 %v5036_v28 }
 0x3b6   :  { %2094 = vmatpush1.bf16.msra.mxu0 %v4973_v31  ;;  %2125 = vmatprep.mubr.bf16.mxu0 %v5359_v8 }
 0x3b7   :  { %2095 = vmatprep.subr.bf16.mxu0 %v4977_v32  ;;  %2168 = vmatprep.mubr.bf16.mxu1 %v5359_v8 }
 0x3b8   :  { %2137 = vmatpush1.bf16.msra.mxu1 %v5060_v29 }
 0x3b9   :  { %2138 = vmatprep.subr.bf16.mxu1 %v5064_v62 }
 0x3ba   :  { %2096 = vmatpush1.bf16.msra.mxu0 %v4979_v33 }
 0x3bb   :  { %2097 = vmatprep.subr.bf16.mxu0 %v4983_v35 }
 0x3bc   :  { %2139 = vmatpush1.bf16.msra.mxu1 %v5066_v61 }
 0x3bd   :  { %2140 = vmatprep.subr.bf16.mxu1 %v5070_v63 }
 0x3be   :  { %2098 = vmatpush1.bf16.msra.mxu0 %v4985_v36 }
 0x3bf   :  { %2099 = vmatprep.subr.bf16.mxu0 %v4989_v37 }
 0x3c0   :  { %2141 = vmatpush1.bf16.msra.mxu1 %v5072_v2 }
 0x3c1   :  { %2142 = vmatprep.subr.bf16.mxu1 %v5076_v20 }
 0x3c2   :  { %2100 = vmatpush1.bf16.msra.mxu0 %v4991_v38 }
 0x3c3   :  { %2101 = vmatprep.subr.bf16.mxu0 %v4995_v39 }
 0x3c4   :  { %2143 = vmatpush1.bf16.msra.mxu1 %v5078_v1 }
 0x3c5   :  { %2144 = vmatprep.subr.bf16.mxu1 %v5082_v24 }
 0x3c6   :  { %2102 = vmatpush1.bf16.msra.mxu0 %v4997_v40 }
 0x3c7   :  { %2103 = vmatprep.subr.bf16.mxu0 %v4999_v41 }
 0x3c8   :  { %2145 = vmatpush1.bf16.msra.mxu1 %v5084_v4 }
 0x3c9   :  { %2146 = vmatprep.subr.bf16.mxu1 %v5086_v34 }
 0x3ca   :  { %2104 = vmatpush1.bf16.msra.mxu0 %v5003_v42 }
 0x3cb   :  { %2105 = vmatprep.subr.bf16.mxu0 %v5006_v43 }
 0x3cc   :  { %2147 = vmatpush1.bf16.msra.mxu1 %v5090_v60 }
 0x3cd   :  { %2148 = vmatprep.subr.bf16.mxu1 %v5093_v58 }
 0x3ce   :  { %2106 = vmatpush1.bf16.msra.mxu0 %v5009_v44 }
 0x3cf   :  { %2107 = vmatprep.subr.bf16.mxu0 %v5012_v45 }
 0x3d0   :  { %2149 = vmatpush1.bf16.msra.mxu1 %v5096_v57 }
 0x3d1   :  { %2150 = vmatprep.subr.bf16.mxu1 %v5099_v59 }
 0x3d2   :  { %2108 = vmatpush1.bf16.msra.mxu0 %v5015_v26 }
 0x3d3   :  { %2439 = vmatprep.subr.bf16.mxu0 %v4971_v30 }
 0x3d4   :  { %2151 = vmatpush1.bf16.msra.mxu1 %v5102_v6 }
 0x3d5   :  { %2482 = vmatprep.subr.bf16.mxu1 %v5058_v17 }
 0x488   :  { %v1781_v3 = vpop.f32.mrb[12].mxu0  ;;  %v1824_v7 = vpop.f32.mrb[28].mxu1 }
 0x489   :  { %v3894_v10 = vadd.f32 %v1781_v3, %v4875_v11  ;;  %v1783_v12 = vpop.f32.mrb[13].mxu0  ;;  %v1826_v14 = vpop.f32.mrb[29].mxu1 }
 0x48a   :  { %v3895_v15 = vadd.f32 %v1783_v12, %v4877_v13  ;;  %v1785_v19 = vpop.f32.mrb[14].mxu0  ;;  %v1828_v21 = vpop.f32.mrb[30].mxu1  ;;  %v3943_v3 = vadd.f32 %v1826_v14, %v4885_v18  ;;  %v3942_v12 = vadd.f32 %v1824_v7, %v4883_v56 }
 0x48b   :  { %v3665_v22 = vmul.f32 -1.442695, %v3894_v10  ;;  %v3896_v23 = vadd.f32 %v1785_v19, %v4875_v11  ;;  %v1787_v25 = vpop.f32.mrb[15].mxu0  ;;  %v1830_v27 = vpop.f32.mrb[31].mxu1  ;;  %v3944_v19 = vadd.f32 %v1828_v21, %v4883_v56 }
 0x48c   :  { %v3667_v28 = vmul.f32 -1.442695, %v3895_v15  ;;  %v3897_v0 = vadd.f32 %v1787_v25, %v4877_v13  ;;  %v3669_v54 = vmul.f32 -1.442695, %v3943_v3  ;;  %v3945_v10 = vadd.f32 %v1830_v27, %v4885_v18 }
 0x48d   :  { %4261 = vpow2.f32 %v3665_v22  ;;  %v3666_v5 = vmul.f32 -1.442695, %v3896_v23 }
 0x48e   :  { %4263 = vpow2.f32 %v3667_v28  ;;  %v3668_v55 = vmul.f32 -1.442695, %v3897_v0  ;;  %v3670_v22 = vmul.f32 -1.442695, %v3945_v10 }
 0x48f   :  { %4265 = vpow2.f32 %v3666_v5 }
 0x490   :  { %4267 = vpow2.f32 %v3668_v55 }
 0x491   :  { %4269 = vtanh.f32 %v3942_v12 }
 0x492   :  { %4271 = vpow2.f32 %v3669_v54 }
 0x493   :  { %4273 = vtanh.f32 %v3944_v19 }
 0x497   :  { %v4262_v53 = vpop.eup %4261 }
 0x498   :  { %v4264_v15 = vpop.eup %4263  ;;  %v1847_v52 = vadd.f32 1.0, %v4262_v53 }
 0x499   :  { %v1859_v23 = vadd.f32 1.0, %v4264_v15  ;;  %v4266_v0 = vpop.eup %4265 }
 0x49a   :  { %4275 = vrcp.f32 %v1847_v52  ;;  %v1848_v5 = vadd.f32 1.0, %v4266_v0  ;;  %v4268_v55 = vpop.eup %4267 }
 0x49b   :  { %4277 = vrcp.f32 %v1859_v23  ;;  %v1860_v28 = vadd.f32 1.0, %v4268_v55  ;;  %v4270_v7 = vpop.eup %4269 }
 0x49c   :  { %4279 = vpow2.f32 %v3670_v22  ;;  %v4272_v14 = vpop.eup %4271 }
 0x49d   :  { %4281 = vrcp.f32 %v1848_v5  ;;  %v4274_v21 = vpop.eup %4273  ;;  %v1873_v10 = vadd.f32 1.0, %v4272_v14 }
 0x49e   :  { %4283 = vrcp.f32 %v1860_v28 }
 0x49f   :  { %4285 = vrcp.f32 %v1873_v10 }
 0x4a4   :  { %v4276_v25 = vpop.eup %4275 }
 0x4a5   :  { %v4278_v27 = vpop.eup %4277  ;;  %v1881_v3 = vmul.f32 %v4276_v25, %v4270_v7 }
 0x4a6   :  { %v4280_v53 = vpop.eup %4279  ;;  %v1879_v54 = vmul.f32 %v4278_v27, %v5029_v9 }
 0x4a7   :  { %v4282_v12 = vpop.eup %4281  ;;  %v1874_v23 = vadd.f32 1.0, %v4280_v53  ;;  %v294_v53 = vadd.f32 %v4844_v48, %v4875_v11 }
 0x4a8   :  { %v5116_v19 = vadd.f32 %v1881_v3, %v1879_v54  ;;  %v1882_v52 = vmul.f32 %v4282_v12, %v4274_v21  ;;  %v4284_v15 = vpop.eup %4283  ;;  %v292_v21 = vadd.f32 %v4842_v47, %v4877_v13 }
 0x4a9   :  { %v1880_v22 = vmul.f32 %v4284_v15, %v5033_v16  ;;  %v4286_v5 = vpop.eup %4285  ;;  %v290_v16 = vadd.f32 %v4840_v46, %v4875_v11 }
 0x4aa   :  { %4287 = vtanh.f32 %v5116_v19 }
 0x4ab   :  { %v5120_v0 = vadd.f32 %v1882_v52, %v1880_v22  ;;  %4289 = vrcp.f32 %v1874_v23  ;;  %v296_v52 = vadd.f32 %v4846_v49, %v4877_v13 }
 0x4ad   :  { %4291 = vtanh.f32 %v5120_v0 }
 0x4b4   :  { %v4288_v55 = vpop.eup %4287 }
 0x4b5   :  { %v4290_v9 = vpop.eup %4289  ;;  %v1887_v7 = vmul.f32 %v4288_v55, %v4286_v5 }
 0x4b7   :  { %v4292_v28 = vpop.eup %4291 }
 0x4b8   :  { %v1888_v14 = vmul.f32 %v4292_v28, %v4290_v9 }
 0x4ba   :  { %v5123_v25 = vpack.c.bf16 %v1888_v14, %v1887_v7 }
 0x4bc   :  { %2126 = vmatmul.mubr.bf16.vlgmr.msra.gmra.mrb[16].mxu0 %v5123_v25  ;;  %2169 = vmatmul.mubr.bf16.vlgmr.msra.gmra.mrb[32].mxu1 %v5123_v25 }
 0x4bd   :  { %2440 = vmatpush1.bf16.msra.mxu0 %v4973_v31  ;;  %2483 = vmatpush1.bf16.msra.mxu1 %v5060_v29 }
 0x4be   :  { %2441 = vmatprep.subr.bf16.mxu0 %v4977_v32  ;;  %2484 = vmatprep.subr.bf16.mxu1 %v5064_v62 }
 0x4bf   :  { %2471 = vmatprep.mubr.bf16.mxu0 %v5359_v8  ;;  %2514 = vmatprep.mubr.bf16.mxu1 %v5359_v8 }
 0x4c1   :  { %2442 = vmatpush1.bf16.msra.mxu0 %v4979_v33  ;;  %2485 = vmatpush1.bf16.msra.mxu1 %v5066_v61 }
 0x4c2   :  { %2443 = vmatprep.subr.bf16.mxu0 %v4983_v35  ;;  %2486 = vmatprep.subr.bf16.mxu1 %v5070_v63 }
 0x4c5   :  { %2444 = vmatpush1.bf16.msra.mxu0 %v4985_v36  ;;  %2487 = vmatpush1.bf16.msra.mxu1 %v5072_v2 }
 0x4c6   :  { %2445 = vmatprep.subr.bf16.mxu0 %v4989_v37  ;;  %2488 = vmatprep.subr.bf16.mxu1 %v5076_v20 }
 0x4c9   :  { %2446 = vmatpush1.bf16.msra.mxu0 %v4991_v38  ;;  %2489 = vmatpush1.bf16.msra.mxu1 %v5078_v1 }
 0x4ca   :  { %2447 = vmatprep.subr.bf16.mxu0 %v4995_v39  ;;  %2490 = vmatprep.subr.bf16.mxu1 %v5082_v24 }
 0x4cd   :  { %2448 = vmatpush1.bf16.msra.mxu0 %v4997_v40  ;;  %2491 = vmatpush1.bf16.msra.mxu1 %v5084_v4 }
 0x4ce   :  { %2449 = vmatprep.subr.bf16.mxu0 %v4999_v41  ;;  %2492 = vmatprep.subr.bf16.mxu1 %v5086_v34 }
 0x4d1   :  { %2450 = vmatpush1.bf16.msra.mxu0 %v5003_v42  ;;  %2493 = vmatpush1.bf16.msra.mxu1 %v5090_v60 }
 0x4d2   :  { %2451 = vmatprep.subr.bf16.mxu0 %v5006_v43  ;;  %2494 = vmatprep.subr.bf16.mxu1 %v5093_v58 }
 0x4d5   :  { %2452 = vmatpush1.bf16.msra.mxu0 %v5009_v44  ;;  %2495 = vmatpush1.bf16.msra.mxu1 %v5096_v57 }
 0x4d6   :  { %2453 = vmatprep.subr.bf16.mxu0 %v5012_v45  ;;  %2496 = vmatprep.subr.bf16.mxu1 %v5099_v59 }
 0x4d9   :  { %2454 = vmatpush1.bf16.msra.mxu0 %v5015_v26  ;;  %2497 = vmatpush1.bf16.msra.mxu1 %v5102_v6 }
 0x4da   :  { %2785 = vmatprep.subr.bf16.mxu0 %v4971_v30  ;;  %2828 = vmatprep.subr.bf16.mxu1 %v5058_v17 }
 0x58f   :  { %v2127_v27 = vpop.f32.mrb[16].mxu0  ;;  %v2170_v3 = vpop.f32.mrb[32].mxu1 }
 0x590   :  { %v2179_v54 = vadd.f32 %v2127_v27, %v290_v16  ;;  %v2129_v12 = vpop.f32.mrb[17].mxu0  ;;  %v2172_v10 = vpop.f32.mrb[33].mxu1  ;;  %v3946_v14 = vadd.f32 %v2170_v3, %v4883_v56 }
 0x591   :  { %v2180_v30 = vadd.f32 %v2129_v12, %v292_v21  ;;  %v2131_v15 = vpop.f32.mrb[18].mxu0  ;;  %v2174_v23 = vpop.f32.mrb[34].mxu1  ;;  %v3947_v48 = vadd.f32 %v2172_v10, %v4885_v18 }
 0x592   :  { %v3703_v22 = vmul.f32 -1.442695, %v2179_v54  ;;  %v2183_v5 = vadd.f32 %v2131_v15, %v294_v53  ;;  %v2133_v46 = vpop.f32.mrb[19].mxu0  ;;  %v2176_v55 = vpop.f32.mrb[35].mxu1  ;;  %v3948_v21 = vadd.f32 %v2174_v23, %v4883_v56 }
 0x593   :  { %v3705_v9 = vmul.f32 -1.442695, %v2180_v30  ;;  %v2184_v47 = vadd.f32 %v2133_v46, %v296_v52  ;;  %v3707_v49 = vmul.f32 -1.442695, %v3947_v48  ;;  %v3949_v16 = vadd.f32 %v2176_v55, %v4885_v18 }
 0x594   :  { %4293 = vpow2.f32 %v3703_v22  ;;  %v3704_v28 = vmul.f32 -1.442695, %v2183_v5 }
 0x595   :  { %4295 = vpow2.f32 %v3705_v9  ;;  %v3706_v7 = vmul.f32 -1.442695, %v2184_v47  ;;  %v3708_v12 = vmul.f32 -1.442695, %v3949_v16 }
 0x596   :  { %4297 = vpow2.f32 %v3704_v28 }
 0x597   :  { %4299 = vpow2.f32 %v3706_v7 }
 0x598   :  { %4301 = vtanh.f32 %v3946_v14 }
 0x599   :  { %4303 = vpow2.f32 %v3707_v49 }
 0x59a   :  { %4305 = vtanh.f32 %v3948_v21 }
 0x59e   :  { %v4294_v27 = vpop.eup %4293 }
 0x59f   :  { %v4296_v53 = vpop.eup %4295  ;;  %v2193_v54 = vadd.f32 1.0, %v4294_v27 }
 0x5a0   :  { %v2205_v52 = vadd.f32 1.0, %v4296_v53  ;;  %v4298_v30 = vpop.eup %4297 }
 0x5a1   :  { %4307 = vrcp.f32 %v2193_v54  ;;  %v2194_v10 = vadd.f32 1.0, %v4298_v30  ;;  %v4300_v15 = vpop.eup %4299 }
 0x5a2   :  { %4309 = vrcp.f32 %v2205_v52  ;;  %v2206_v3 = vadd.f32 1.0, %v4300_v15  ;;  %v4302_v22 = vpop.eup %4301 }
 0x5a3   :  { %4311 = vpow2.f32 %v3708_v12  ;;  %v4304_v5 = vpop.eup %4303 }
 0x5a4   :  { %4313 = vrcp.f32 %v2194_v10  ;;  %v4306_v23 = vpop.eup %4305  ;;  %v2219_v48 = vadd.f32 1.0, %v4304_v5 }
 0x5a5   :  { %4315 = vrcp.f32 %v2206_v3 }
 0x5a6   :  { %4317 = vrcp.f32 %v2219_v48 }
 0x5ab   :  { %v4308_v46 = vpop.eup %4307 }
 0x5ac   :  { %v4310_v55 = vpop.eup %4309  ;;  %v2227_v9 = vmul.f32 %v4308_v46, %v4302_v22 }
 0x5ad   :  { %v4312_v47 = vpop.eup %4311  ;;  %v2225_v28 = vmul.f32 %v4310_v55, %v5116_v19 }
 0x5ae   :  { %v4314_v7 = vpop.eup %4313  ;;  %v2220_v21 = vadd.f32 1.0, %v4312_v47 }
 0x5af   :  { %v5174_v14 = vadd.f32 %v2227_v9, %v2225_v28  ;;  %v2228_v49 = vmul.f32 %v4314_v7, %v4306_v23  ;;  %v4316_v16 = vpop.eup %4315 }
 0x5b0   :  { %v2226_v27 = vmul.f32 %v4316_v16, %v5120_v0  ;;  %v4318_v54 = vpop.eup %4317 }
 0x5b1   :  { %4319 = vtanh.f32 %v5174_v14 }
 0x5b2   :  { %v5178_v53 = vadd.f32 %v2228_v49, %v2226_v27  ;;  %4321 = vrcp.f32 %v2220_v21 }
 0x5b4   :  { %4323 = vtanh.f32 %v5178_v53 }
 0x5bb   :  { %v4320_v12 = vpop.eup %4319 }
 0x5bc   :  { %v4322_v19 = vpop.eup %4321  ;;  %v2233_v30 = vmul.f32 %v4320_v12, %v4318_v54 }
 0x5be   :  { %v4324_v52 = vpop.eup %4323 }
 0x5bf   :  { %v2234_v10 = vmul.f32 %v4324_v52, %v4322_v19 }
 0x5c1   :  { %v5181_v15 = vpack.c.bf16 %v2234_v10, %v2233_v30 }
 0x5c3   :  { %2472 = vmatmul.mubr.bf16.vlgmr.msra.gmra.mrb[20].mxu0 %v5181_v15  ;;  %2515 = vmatmul.mubr.bf16.vlgmr.msra.gmra.mrb[36].mxu1 %v5181_v15 }
 0x5c4   :  { %2786 = vmatpush1.bf16.msra.mxu0 %v4973_v31  ;;  %2829 = vmatpush1.bf16.msra.mxu1 %v5060_v29  ;;  %v300_v31 = vadd.f32 %v4848_v50, %v4875_v11 }
 0x5c5   :  { %2787 = vmatprep.subr.bf16.mxu0 %v4977_v32  ;;  %2830 = vmatprep.subr.bf16.mxu1 %v5064_v62  ;;  %v302_v32 = vadd.f32 %v4850_v51, %v4877_v13 }
 0x5c6   :  { %2817 = vmatprep.mubr.bf16.mxu0 %v5359_v8  ;;  %2860 = vmatprep.mubr.bf16.mxu1 %v5359_v8 }
 0x5c8   :  { %2788 = vmatpush1.bf16.msra.mxu0 %v4979_v33  ;;  %2831 = vmatpush1.bf16.msra.mxu1 %v5066_v61 }
 0x5c9   :  { %2789 = vmatprep.subr.bf16.mxu0 %v4983_v35  ;;  %2832 = vmatprep.subr.bf16.mxu1 %v5070_v63 }
 0x5cc   :  { %2790 = vmatpush1.bf16.msra.mxu0 %v4985_v36  ;;  %2833 = vmatpush1.bf16.msra.mxu1 %v5072_v2  ;;  %v5362_v36 = vld [vmem:[#allocation19_spill] sm:$0xff] }
 0x5cd   :  { %2791 = vmatprep.subr.bf16.mxu0 %v4989_v37  ;;  %2834 = vmatprep.subr.bf16.mxu1 %v5076_v20  ;;  %v304_v37 = vadd.f32 %v5362_v36, %v4875_v11 }
 0x5d0   :  { %2792 = vmatpush1.bf16.msra.mxu0 %v4991_v38  ;;  %2835 = vmatpush1.bf16.msra.mxu1 %v5078_v1 }
 0x5d1   :  { %2793 = vmatprep.subr.bf16.mxu0 %v4995_v39  ;;  %2836 = vmatprep.subr.bf16.mxu1 %v5082_v24 }
 0x5d4   :  { %2794 = vmatpush1.bf16.msra.mxu0 %v4997_v40  ;;  %2837 = vmatpush1.bf16.msra.mxu1 %v5084_v4 }
 0x5d5   :  { %2795 = vmatprep.subr.bf16.mxu0 %v4999_v41  ;;  %2838 = vmatprep.subr.bf16.mxu1 %v5086_v34  ;;  %v5363_v41 = vld [vmem:[#allocation20_spill] sm:$0xff] }
 0x5d8   :  { %2796 = vmatpush1.bf16.msra.mxu0 %v5003_v42  ;;  %2839 = vmatpush1.bf16.msra.mxu1 %v5090_v60  ;;  %v306_v42 = vadd.f32 %v5363_v41, %v4877_v13 }
 0x5d9   :  { %2797 = vmatprep.subr.bf16.mxu0 %v5006_v43  ;;  %2840 = vmatprep.subr.bf16.mxu1 %v5093_v58 }
 0x5dc   :  { %2798 = vmatpush1.bf16.msra.mxu0 %v5009_v44  ;;  %2841 = vmatpush1.bf16.msra.mxu1 %v5096_v57 }
 0x5dd   :  { %2799 = vmatprep.subr.bf16.mxu0 %v5012_v45  ;;  %2842 = vmatprep.subr.bf16.mxu1 %v5099_v59 }
 0x5e0   :  { %2800 = vmatpush1.bf16.msra.mxu0 %v5015_v26  ;;  %2843 = vmatpush1.bf16.msra.mxu1 %v5102_v6 }
 0x5e1   :  { %3174 = vmatprep.subr.bf16.mxu1 %v5058_v17 }
 0x696   :  { %v2473_v33 = vpop.f32.mrb[20].mxu0  ;;  %v2516_v35 = vpop.f32.mrb[36].mxu1 }
 0x697   :  { %v2525_v38 = vadd.f32 %v2473_v33, %v300_v31  ;;  %v2475_v39 = vpop.f32.mrb[21].mxu0  ;;  %v2518_v40 = vpop.f32.mrb[37].mxu1  ;;  %v3950_v46 = vadd.f32 %v2516_v35, %v4883_v56 }
 0x698   :  { %v2526_v43 = vadd.f32 %v2475_v39, %v302_v32  ;;  %v2477_v44 = vpop.f32.mrb[22].mxu0  ;;  %v2520_v45 = vpop.f32.mrb[38].mxu1  ;;  %v3951_v23 = vadd.f32 %v2518_v40, %v4885_v18 }
 0x699   :  { %v3741_v26 = vmul.f32 -1.442695, %v2525_v38  ;;  %v2529_v17 = vadd.f32 %v2477_v44, %v304_v37  ;;  %v2479_v50 = vpop.f32.mrb[23].mxu0  ;;  %v2522_v0 = vpop.f32.mrb[39].mxu1  ;;  %v3952_v47 = vadd.f32 %v2520_v45, %v4883_v56 }
 0x69a   :  { %v3743_v3 = vmul.f32 -1.442695, %v2526_v43  ;;  %v2530_v51 = vadd.f32 %v2479_v50, %v306_v42  ;;  %v3745_v55 = vmul.f32 -1.442695, %v3951_v23  ;;  %v3953_v9 = vadd.f32 %v2522_v0, %v4885_v18 }
 0x69b   :  { %4325 = vpow2.f32 %v3741_v26  ;;  %v3742_v22 = vmul.f32 -1.442695, %v2529_v17 }
 0x69c   :  { %4327 = vpow2.f32 %v3743_v3  ;;  %v3744_v5 = vmul.f32 -1.442695, %v2530_v51  ;;  %v3746_v49 = vmul.f32 -1.442695, %v3953_v9  ;;  %v5364_v3 = vld [vmem:[#allocation21_spill] sm:$0xff] }
 0x69d   :  { %4329 = vpow2.f32 %v3742_v22  ;;  %v310_v51 = vadd.f32 %v5364_v3, %v4875_v11  ;;  %v5365_v22 = vld [vmem:[#allocation22_spill] sm:$0xff] }
 0x69e   :  { %4331 = vpow2.f32 %v3744_v5  ;;  %v312_v5 = vadd.f32 %v5365_v22, %v4877_v13 }
 0x69f   :  { %4333 = vtanh.f32 %v3950_v46 }
 0x6a0   :  { %4335 = vpow2.f32 %v3745_v55  ;;  %v5366_v55 = vld [vmem:[#allocation23_spill] sm:$0xff] }
 0x6a1   :  { %4337 = vtanh.f32 %v3952_v47  ;;  %v314_v9 = vadd.f32 %v5366_v55, %v4875_v11  ;;  %v4158_v55 = vld [vmem:[#allocation12 + $0x8] sm:$0xff]  }
 0x6a5   :  { %v4326_v28 = vpop.eup %4325 }
 0x6a6   :  { %v4328_v7 = vpop.eup %4327  ;;  %v2539_v48 = vadd.f32 1.0, %v4326_v28 }
 0x6a7   :  { %v2551_v16 = vadd.f32 1.0, %v4328_v7  ;;  %v4330_v21 = vpop.eup %4329 }
 0x6a8   :  { %4339 = vrcp.f32 %v2539_v48  ;;  %v2540_v27 = vadd.f32 1.0, %v4330_v21  ;;  %v4332_v54 = vpop.eup %4331  ;;  %v5367_v48 = vld [vmem:[#allocation24_spill] sm:$0xff] }
 0x6a9   :  { %4341 = vrcp.f32 %v2551_v16  ;;  %v2552_v12 = vadd.f32 1.0, %v4332_v54  ;;  %v4334_v19 = vpop.eup %4333 }
 0x6aa   :  { %4343 = vpow2.f32 %v3746_v49  ;;  %v4336_v52 = vpop.eup %4335  ;;  %v316_v49 = vadd.f32 %v5367_v48, %v4877_v13  ;;  %v4163_v48 = vld [vmem:[#allocation12 + $0x30] sm:$0xff]  }
 0x6ab   :  { %4345 = vrcp.f32 %v2540_v27  ;;  %v4338_v30 = vpop.eup %4337  ;;  %v2565_v37 = vadd.f32 1.0, %v4336_v52 }
 0x6ac   :  { %4347 = vrcp.f32 %v2552_v12 }
 0x6ad   :  { %4349 = vrcp.f32 %v2565_v37 }
 0x6b2   :  { %v4340_v10 = vpop.eup %4339 }
 0x6b3   :  { %v4342_v31 = vpop.eup %4341  ;;  %v2573_v32 = vmul.f32 %v4340_v10, %v4334_v19 }
 0x6b4   :  { %v4344_v33 = vpop.eup %4343  ;;  %v2571_v35 = vmul.f32 %v4342_v31, %v5174_v14 }
 0x6b5   :  { %v4346_v36 = vpop.eup %4345  ;;  %v2566_v41 = vadd.f32 1.0, %v4344_v33 }
 0x6b6   :  { %v5231_v38 = vadd.f32 %v2573_v32, %v2571_v35  ;;  %v2574_v39 = vmul.f32 %v4346_v36, %v4338_v30  ;;  %v4348_v40 = vpop.eup %4347 }
 0x6b7   :  { %v2572_v42 = vmul.f32 %v4348_v40, %v5178_v53  ;;  %v4350_v44 = vpop.eup %4349  ;;  %v5259_v53 = vld [vmem:[#allocation12] sm:$0xff]  }
 0x6b8   :  { %4351 = vtanh.f32 %v5231_v38 }
 0x6b9   :  { %v5235_v43 = vadd.f32 %v2574_v39, %v2572_v42  ;;  %4353 = vrcp.f32 %v2566_v41 }
 0x6bb   :  { %4355 = vtanh.f32 %v5235_v43 }
 0x6c2   :  { %v4352_v45 = vpop.eup %4351 }
 0x6c3   :  { %v4354_v14 = vpop.eup %4353  ;;  %v2579_v17 = vmul.f32 %v4352_v45, %v4350_v44 }
 0x6c5   :  { %v4356_v26 = vpop.eup %4355 }
 0x6c6   :  { %v2580_v50 = vmul.f32 %v4356_v26, %v4354_v14 }
 0x6c8   :  { %v5238_v0 = vpack.c.bf16 %v2580_v50, %v2579_v17 }
 0x6ca   :  { %2818 = vmatmul.mubr.bf16.vlgmr.msra.gmra.mrb[24].mxu0 %v5238_v0  ;;  %2861 = vmatmul.mubr.bf16.vlgmr.msra.gmra.mrb[40].mxu1 %v5238_v0 }
 0x6cb   :  { %3175 = vmatpush1.bf16.msra.mxu1 %v5060_v29  ;;  %3163 = vmatprep.mubr.bf16.mxu0 %v5359_v8  ;;  %v4133_v29 = vld [vmem:[#allocation11] ss:$16 sps:$4 sm:$0xff]  }
 0x6cc   :  { %3176 = vmatprep.subr.bf16.mxu1 %v5064_v62  ;;  %3206 = vmatprep.mubr.bf16.mxu1 %v5359_v8  ;;  %v4135_v8 = vld [vmem:[#allocation11 + $0x4] ss:$16 sps:$4 sm:$0xff]  }
 0x6cd   :  { %3131 = vmatprep.subr.bf16.mxu0 %v4135_v8  ;;  %v4138_v62 = vld [vmem:[#allocation11 + $0x24] ss:$16 sps:$4 sm:$0xff]  }
 0x6ce   :  { %3132 = vmatpush1.bf16.msra.mxu0 %v4133_v29 }
 0x6cf   :  { %3177 = vmatpush1.bf16.msra.mxu1 %v5066_v61  ;;  %v4136_v61 = vld [vmem:[#allocation11 + $0x20] ss:$16 sps:$4 sm:$0xff]   ;;  %3133 = vmatprep.subr.bf16.mxu0 %v4138_v62 }
 0x6d0   :  { %3178 = vmatprep.subr.bf16.mxu1 %v5070_v63  ;;  %v4141_v63 = vld [vmem:[#allocation11 + $0x44] ss:$16 sps:$4 sm:$0xff]  }
 0x6d2   :  { %3134 = vmatpush1.bf16.msra.mxu0 %v4136_v61 }
 0x6d3   :  { %3179 = vmatpush1.bf16.msra.mxu1 %v5072_v2  ;;  %v4139_v2 = vld [vmem:[#allocation11 + $0x40] ss:$16 sps:$4 sm:$0xff]   ;;  %3135 = vmatprep.subr.bf16.mxu0 %v4141_v63 }
 0x6d4   :  { %3180 = vmatprep.subr.bf16.mxu1 %v5076_v20  ;;  %v4144_v20 = vld [vmem:[#allocation11 + $0x64] ss:$16 sps:$4 sm:$0xff]  }
 0x6d6   :  { %3136 = vmatpush1.bf16.msra.mxu0 %v4139_v2 }
 0x6d7   :  { %3181 = vmatpush1.bf16.msra.mxu1 %v5078_v1  ;;  %v4142_v1 = vld [vmem:[#allocation11 + $0x60] ss:$16 sps:$4 sm:$0xff]   ;;  %3137 = vmatprep.subr.bf16.mxu0 %v4144_v20 }
 0x6d8   :  { %3182 = vmatprep.subr.bf16.mxu1 %v5082_v24  ;;  %v4147_v24 = vld [vmem:[#allocation11 + $0x84] ss:$16 sps:$4 sm:$0xff]  }
 0x6da   :  { %3138 = vmatpush1.bf16.msra.mxu0 %v4142_v1 }
 0x6db   :  { %3183 = vmatpush1.bf16.msra.mxu1 %v5084_v4  ;;  %v4145_v4 = vld [vmem:[#allocation11 + $0x80] ss:$16 sps:$4 sm:$0xff]   ;;  %3139 = vmatprep.subr.bf16.mxu0 %v4147_v24 }
 0x6dc   :  { %3184 = vmatprep.subr.bf16.mxu1 %v5086_v34  ;;  %v4150_v34 = vld [vmem:[#allocation11 + $0xa4] ss:$16 sps:$4 sm:$0xff]  }
 0x6de   :  { %3140 = vmatpush1.bf16.msra.mxu0 %v4145_v4 }
 0x6df   :  { %3185 = vmatpush1.bf16.msra.mxu1 %v5090_v60  ;;  %v4148_v60 = vld [vmem:[#allocation11 + $0xa0] ss:$16 sps:$4 sm:$0xff]   ;;  %3141 = vmatprep.subr.bf16.mxu0 %v4150_v34 }
 0x6e0   :  { %3186 = vmatprep.subr.bf16.mxu1 %v5093_v58  ;;  %v4153_v58 = vld [vmem:[#allocation11 + $0xc4] ss:$16 sps:$4 sm:$0xff]  }
 0x6e2   :  { %3142 = vmatpush1.bf16.msra.mxu0 %v4148_v60 }
 0x6e3   :  { %3187 = vmatpush1.bf16.msra.mxu1 %v5096_v57  ;;  %v4151_v57 = vld [vmem:[#allocation11 + $0xc0] ss:$16 sps:$4 sm:$0xff]   ;;  %3143 = vmatprep.subr.bf16.mxu0 %v4153_v58 }
 0x6e4   :  { %3188 = vmatprep.subr.bf16.mxu1 %v5099_v59  ;;  %v4156_v59 = vld [vmem:[#allocation11 + $0xe4] ss:$16 sps:$4 sm:$0xff]  }
 0x6e6   :  { %3144 = vmatpush1.bf16.msra.mxu0 %v4151_v57 }
 0x6e7   :  { %3189 = vmatpush1.bf16.msra.mxu1 %v5102_v6  ;;  %v4154_v6 = vld [vmem:[#allocation11 + $0xe0] ss:$16 sps:$4 sm:$0xff]   ;;  %3145 = vmatprep.subr.bf16.mxu0 %v4156_v59 }
 0x6ea   :  { %3146 = vmatpush1.bf16.msra.mxu0 %v4154_v6 }
 0x6eb   :  { %3848 = vmatprep.subr.bf16.mxu0 %v5259_v53 }
 0x79d   :  { %v2819_v23 = vpop.f32.mrb[24].mxu0  ;;  %v2862_v46 = vpop.f32.mrb[40].mxu1 }
 0x79e   :  { %v2871_v47 = vadd.f32 %v2819_v23, %v310_v51  ;;  %v2821_v28 = vpop.f32.mrb[25].mxu0  ;;  %v2864_v7 = vpop.f32.mrb[41].mxu1  ;;  %v3954_v35 = vadd.f32 %v2862_v46, %v4883_v56 }
 0x79f   :  { %v2872_v16 = vadd.f32 %v2821_v28, %v312_v5  ;;  %v2823_v21 = vpop.f32.mrb[26].mxu0  ;;  %v2866_v27 = vpop.f32.mrb[42].mxu1  ;;  %v3955_v33 = vadd.f32 %v2864_v7, %v4885_v18  ;;  %v4161_v28 = vld [vmem:[#allocation12 + $0x20] sm:$0xff]   ;;  %v4162_v7 = vld [vmem:[#allocation12 + $0x28] sm:$0xff]  }
 0x7a0   :  { %v3779_v54 = vmul.f32 -1.442695, %v2871_v47  ;;  %v2875_v12 = vadd.f32 %v2823_v21, %v314_v9  ;;  %v2825_v19 = vpop.f32.mrb[27].mxu0  ;;  %v2868_v52 = vpop.f32.mrb[43].mxu1  ;;  %v3956_v39 = vadd.f32 %v2866_v27, %v4883_v56  ;;  %v4159_v9 = vld [vmem:[#allocation12 + $0x10] sm:$0xff]   ;;  %v4160_v47 = vld [vmem:[#allocation12 + $0x18] sm:$0xff]  }
 0x7a1   :  { %v3781_v30 = vmul.f32 -1.442695, %v2872_v16  ;;  %v2876_v10 = vadd.f32 %v2825_v19, %v316_v49  ;;  %v3783_v36 = vmul.f32 -1.442695, %v3955_v33  ;;  %v3957_v37 = vadd.f32 %v2868_v52, %v4885_v18  ;;  %v4164_v49 = vld [vmem:[#allocation12 + $0x38] sm:$0xff]   ;;  %v5370_v16 = vld [vmem:[#allocation31_spill] sm:$0xff] }
 0x7a2   :  { %4357 = vpow2.f32 %v3779_v54  ;;  %v3780_v31 = vmul.f32 -1.442695, %v2875_v12  ;;  %v5371_v21 = vld [vmem:[#allocation25_spill] sm:$0xff]  ;;  %v5372_v54 = vld [vmem:[#allocation26_spill] sm:$0xff] }
 0x7a3   :  { %4359 = vpow2.f32 %v3781_v30  ;;  %v3782_v32 = vmul.f32 -1.442695, %v2876_v10  ;;  %v3784_v44 = vmul.f32 -1.442695, %v3957_v37  ;;  %v320_v27 = vadd.f32 %v5371_v21, %v4875_v11  ;;  %v5373_v30 = vld [vmem:[#allocation27_spill] sm:$0xff] }
 0x7a4   :  { %4361 = vpow2.f32 %v3780_v31  ;;  %v322_v12 = vadd.f32 %v5372_v54, %v4877_v13  ;;  %v324_v10 = vadd.f32 %v5373_v30, %v4875_v11 }
 0x7a5   :  { %4363 = vpow2.f32 %v3782_v32 }
 0x7a6   :  { %4365 = vtanh.f32 %v3954_v35 }
 0x7a7   :  { %4367 = vpow2.f32 %v3783_v36 }
 0x7a8   :  { %4369 = vtanh.f32 %v3956_v39 }
 0x7ac   :  { %v4358_v40 = vpop.eup %4357 }
 0x7ad   :  { %v4360_v41 = vpop.eup %4359  ;;  %v2885_v42 = vadd.f32 1.0, %v4358_v40 }
 0x7ae   :  { %v2897_v45 = vadd.f32 1.0, %v4360_v41  ;;  %v4362_v14 = vpop.eup %4361 }
 0x7af   :  { %4371 = vrcp.f32 %v2885_v42  ;;  %v2886_v26 = vadd.f32 1.0, %v4362_v14  ;;  %v4364_v17 = vpop.eup %4363 }
 0x7b0   :  { %4373 = vrcp.f32 %v2897_v45  ;;  %v2898_v50 = vadd.f32 1.0, %v4364_v17  ;;  %v4366_v8 = vpop.eup %4365 }
 0x7b1   :  { %4375 = vpow2.f32 %v3784_v44  ;;  %v4368_v29 = vpop.eup %4367 }
 0x7b2   :  { %4377 = vrcp.f32 %v2886_v26  ;;  %v4370_v62 = vpop.eup %4369  ;;  %v2911_v4 = vadd.f32 1.0, %v4368_v29 }
 0x7b3   :  { %4379 = vrcp.f32 %v2898_v50 }
 0x7b4   :  { %4381 = vrcp.f32 %v2911_v4 }
 0x7b9   :  { %v4372_v61 = vpop.eup %4371 }
 0x7ba   :  { %v4374_v63 = vpop.eup %4373  ;;  %v2919_v2 = vmul.f32 %v4372_v61, %v4366_v8 }
 0x7bb   :  { %v4376_v20 = vpop.eup %4375  ;;  %v2917_v1 = vmul.f32 %v4374_v63, %v5231_v38 }
 0x7bc   :  { %v4378_v24 = vpop.eup %4377  ;;  %v2912_v57 = vadd.f32 1.0, %v4376_v20 }
 0x7bd   :  { %v5275_v34 = vadd.f32 %v2919_v2, %v2917_v1  ;;  %v2920_v60 = vmul.f32 %v4378_v24, %v4370_v62  ;;  %v4380_v58 = vpop.eup %4379 }
 0x7be   :  { %v2918_v59 = vmul.f32 %v4380_v58, %v5235_v43  ;;  %v4382_v3 = vpop.eup %4381  ;;  %v5368_v43 = vld [vmem:[#allocation29_spill] sm:$0xff] }
 0x7bf   :  { %4383 = vtanh.f32 %v5275_v34 }
 0x7c0   :  { %v5279_v6 = vadd.f32 %v2920_v60, %v2918_v59  ;;  %4385 = vrcp.f32 %v2912_v57 }
 0x7c2   :  { %4387 = vtanh.f32 %v5279_v6 }
 0x7c9   :  { %v4384_v51 = vpop.eup %4383 }
 0x7ca   :  { %v4386_v38 = vpop.eup %4385  ;;  %v2925_v5 = vmul.f32 %v4384_v51, %v4382_v3 }
 0x7cc   :  { %v4388_v22 = vpop.eup %4387 }
 0x7cd   :  { %v2926_v23 = vmul.f32 %v4388_v22, %v4386_v38  ;;  %v5305_v38 = vld [vmem:[%s5341_s5] ss:$0 sm:$0xff]  ;;  %s4549_s5 = smov [#allocation14]  }
 0x7ce   :  { %s3477_s21 = sshll.u32 %s4549_s5, 4  ;;  %s3478_s21 = int_to_ptr.vmem [resolvable:$true] %s3477_s21 }
 0x7cf   :  { %v2927_v46 = vpack.c.bf16 %v2926_v23, %v2925_v5  ;;  %s4509_s24 = scalar_lea.vmem %s3478_s21, 2048  ;;  %p4514_p5 = scmp.lt.s32.totalorder %s3478_s21, %s3478_s21 }
 0x7d0   :  { %p4510_p4 = scmp.ne.s32.totalorder %s3478_s21, %s4509_s24  ;;  %p4515_p6 = scmp.lt.s32.totalorder %s4509_s24, %s4509_s24 }
 0x7d1   :  { %3164 = vmatmul.mubr.bf16.vlgmr.msra.gmra.mrb[28].mxu0 %v2927_v46  ;;  %3207 = vmatmul.mubr.bf16.vlgmr.msra.gmra.mrb[44].mxu1 %v2927_v46 }
 0x7d2   :  { %3849 = vmatpush3.bf16.msra.mxu0 %v5259_v53  ;;  %3864 = vmatprep.mubr.bf16.mxu0 %v5368_v43  ;;  %v5369_v53 = vld [vmem:[#allocation30_spill] sm:$0xff]  ;;  %p4516_p7 = por %p4515_p6, %p4514_p5 }
 0x7d3   :  { %3850 = vmatprep.subr.bf16.mxu0 %v4158_v55 }
 0x7d4   :  { %p4517_p8 = pnand %p4516_p7, %p4510_p4 }
 0x7d6   :  { %3851 = vmatpush3.bf16.msra.mxu0 %v4158_v55 }
 0x7d7   :  { %3852 = vmatprep.subr.bf16.mxu0 %v4159_v9 }
 0x7da   :  { %3853 = vmatpush3.bf16.msra.mxu0 %v4159_v9 }
 0x7db   :  { %3854 = vmatprep.subr.bf16.mxu0 %v4160_v47 }
 0x7de   :  { %3855 = vmatpush3.bf16.msra.mxu0 %v4160_v47 }
 0x7df   :  { %3856 = vmatprep.subr.bf16.mxu0 %v4161_v28 }
 0x7e2   :  { %3857 = vmatpush3.bf16.msra.mxu0 %v4161_v28 }
 0x7e3   :  { %3858 = vmatprep.subr.bf16.mxu0 %v4162_v7 }
 0x7e6   :  { %3859 = vmatpush3.bf16.msra.mxu0 %v4162_v7 }
 0x7e7   :  { %3860 = vmatprep.subr.bf16.mxu0 %v4163_v48 }
 0x7ea   :  { %3861 = vmatpush3.bf16.msra.mxu0 %v4163_v48 }
 0x7eb   :  { %3862 = vmatprep.subr.bf16.mxu0 %v4164_v49 }
 0x7ee   :  { %3863 = vmatpush3.bf16.msra.mxu0 %v4164_v49 }
 0x7f1   :  { %3865 = vmatmul.mubr.bf16.vlgmr.msra.gmra.mrb[32].mxu0 %v5369_v53 }
 0x7f2   :  { %3868 = vmatprep.mubr.bf16.mxu0 %v5370_v16 }
 0x7f9   :  { %3869 = vmatmul.mubr.bf16.gmra.mrb[36].mxu0 %v5123_v25  ;;  %v5374_v25 = vld [vmem:[#allocation28_spill] sm:$0xff] }
 0x7fa   :  { %3872 = vmatprep.mubr.bf16.mxu0 %v5181_v15  ;;  %v326_v15 = vadd.f32 %v5374_v25, %v4877_v13 }
 0x801   :  { %3873 = vmatmul.mubr.bf16.gmra.mrb[40].mxu0 %v5238_v0 }
 0x802   :  { %3876 = vmatprep.mubr.bf16.mxu0 %v2927_v46 }
 0x8a4   :  { %v3165_v19 = vpop.f32.mrb[28].mxu0  ;;  %v3208_v52 = vpop.f32.mrb[44].mxu1 }
 0x8a5   :  { %v3217_v31 = vadd.f32 %v3165_v19, %v320_v27  ;;  %v3167_v32 = vpop.f32.mrb[29].mxu0  ;;  %v3210_v33 = vpop.f32.mrb[45].mxu1  ;;  %v3958_v26 = vadd.f32 %v3208_v52, %v4883_v56 }
 0x8a6   :  { %v3218_v35 = vadd.f32 %v3167_v32, %v322_v12  ;;  %v3169_v0 = vpop.f32.mrb[30].mxu0  ;;  %v3212_v36 = vpop.f32.mrb[46].mxu1  ;;  %v3959_v11 = vadd.f32 %v3210_v33, %v4885_v18 }
 0x8a7   :  { %v3817_v37 = vmul.f32 -1.442695, %v3217_v31  ;;  %v3221_v39 = vadd.f32 %v3169_v0, %v324_v10  ;;  %v3171_v40 = vpop.f32.mrb[31].mxu0  ;;  %v3214_v41 = vpop.f32.mrb[47].mxu1  ;;  %v3960_v50 = vadd.f32 %v3212_v36, %v4883_v56 }
 0x8a8   :  { %v3819_v42 = vmul.f32 -1.442695, %v3218_v35  ;;  %v3222_v44 = vadd.f32 %v3171_v40, %v326_v15  ;;  %v3821_v13 = vmul.f32 -1.442695, %v3959_v11  ;;  %v3961_v17 = vadd.f32 %v3214_v41, %v4885_v18 }
 0x8a9   :  { %4389 = vpow2.f32 %v3817_v37  ;;  %v3818_v45 = vmul.f32 -1.442695, %v3221_v39 }
 0x8aa   :  { %4391 = vpow2.f32 %v3819_v42  ;;  %v3820_v14 = vmul.f32 -1.442695, %v3222_v44  ;;  %v3822_v61 = vmul.f32 -1.442695, %v3961_v17 }
 0x8ab   :  { %4393 = vpow2.f32 %v3818_v45 }
 0x8ac   :  { %4395 = vpow2.f32 %v3820_v14 }
 0x8ad   :  { %4397 = vtanh.f32 %v3958_v26 }
 0x8ae   :  { %4399 = vpow2.f32 %v3821_v13 }
 0x8af   :  { %4401 = vtanh.f32 %v3960_v50 }
 0x8b3   :  { %v4390_v8 = vpop.eup %4389 }
 0x8b4   :  { %v4392_v29 = vpop.eup %4391  ;;  %v3231_v62 = vadd.f32 1.0, %v4390_v8 }
 0x8b5   :  { %v3243_v63 = vadd.f32 1.0, %v4392_v29  ;;  %v4394_v2 = vpop.eup %4393 }
 0x8b6   :  { %4403 = vrcp.f32 %v3231_v62  ;;  %v3232_v20 = vadd.f32 1.0, %v4394_v2  ;;  %v4396_v1 = vpop.eup %4395 }
 0x8b7   :  { %4405 = vrcp.f32 %v3243_v63  ;;  %v3244_v24 = vadd.f32 1.0, %v4396_v1  ;;  %v4398_v18 = vpop.eup %4397 }
 0x8b8   :  { %4407 = vpow2.f32 %v3822_v61  ;;  %v4400_v4 = vpop.eup %4399 }
 0x8b9   :  { %4409 = vrcp.f32 %v3232_v20  ;;  %v4402_v56 = vpop.eup %4401  ;;  %v3257_v59 = vadd.f32 1.0, %v4400_v4 }
 0x8ba   :  { %4411 = vrcp.f32 %v3244_v24 }
 0x8bb   :  { %4413 = vrcp.f32 %v3257_v59 }
 0x8c0   :  { %v4404_v60 = vpop.eup %4403 }
 0x8c1   :  { %v4406_v58 = vpop.eup %4405  ;;  %v3265_v57 = vmul.f32 %v4404_v60, %v4398_v18 }
 0x8c2   :  { %v4408_v3 = vpop.eup %4407  ;;  %v3263_v51 = vmul.f32 %v4406_v58, %v5275_v34 }
 0x8c3   :  { %v4410_v22 = vpop.eup %4409  ;;  %v3258_v43 = vadd.f32 1.0, %v4408_v3 }
 0x8c4   :  { %v3266_v5 = vmul.f32 %v4410_v22, %v4402_v56  ;;  %v3866_v23 = vpop.f32.mrb[32].mxu0  ;;  %v3267_v46 = vadd.f32 %v3265_v57, %v3263_v51  ;;  %v4412_v55 = vpop.eup %4411 }
 0x8c5   :  { %v3402_v9 = vadd.f32 %v3866_v23, %v5305_v38  ;;  %v3393_v47 = vpop.f32.mrb[33].mxu0  ;;  %v3264_v28 = vmul.f32 %v4412_v55, %v5279_v6  ;;  %v4414_v19 = vpop.eup %4413 }
 0x8c6   :  { %v3394_v7 = vadd.f32 %v5305_v38, %v3393_v47  ;;  %v3867_v34 = vpop.f32.mrb[34].mxu0  ;;  %4415 = vtanh.f32 %v3267_v46 }
 0x8c7   :  { %3458 = vst [vmem:[#allocation14 + $0x10] sm:$0xff] %v3402_v9  ;;  %v3405_v48 = vadd.f32 %v3867_v34, %v5305_v38  ;;  %v3396_v49 = vpop.f32.mrb[35].mxu0  ;;  %v3268_v16 = vadd.f32 %v3266_v5, %v3264_v28  ;;  %4417 = vrcp.f32 %v3258_v43 }
 0x8c8   :  { %3456 = vst [vmem:[#allocation14] sm:$0xff] %v3394_v7  ;;  %v3397_v53 = vadd.f32 %v5305_v38, %v3396_v49 }
 0x8c9   :  { %3459 = vst [vmem:[#allocation14 + $0x18] sm:$0xff] %v3405_v48  ;;  %4419 = vtanh.f32 %v3268_v16 }
 0x8ca   :  { %3457 = vst [vmem:[#allocation14 + $0x8] sm:$0xff] %v3397_v53 }
 0x8cc   :  { %v3870_v21 = vpop.f32.mrb[36].mxu0 }
 0x8cd   :  { %v3418_v27 = vadd.f32 %v3870_v21, %v5305_v38  ;;  %v3409_v6 = vpop.f32.mrb[37].mxu0 }
 0x8ce   :  { %v3410_v54 = vadd.f32 %v5305_v38, %v3409_v6  ;;  %v3871_v12 = vpop.f32.mrb[38].mxu0 }
 0x8cf   :  { %3462 = vst [vmem:[#allocation14 + $0x30] sm:$0xff] %v3418_v27  ;;  %v3421_v52 = vadd.f32 %v3871_v12, %v5305_v38  ;;  %v3412_v30 = vpop.f32.mrb[39].mxu0 }
 0x8d0   :  { %v4416_v10 = vpop.eup %4415  ;;  %3460 = vst [vmem:[#allocation14 + $0x20] sm:$0xff] %v3410_v54  ;;  %v3413_v31 = vadd.f32 %v5305_v38, %v3412_v30 }
 0x8d1   :  { %3463 = vst [vmem:[#allocation14 + $0x38] sm:$0xff] %v3421_v52  ;;  %v3271_v32 = vmul.f32 %v4416_v10, %v4414_v19  ;;  %v4418_v33 = vpop.eup %4417 }
 0x8d2   :  { %3461 = vst [vmem:[#allocation14 + $0x28] sm:$0xff] %v3413_v31 }
 0x8d3   :  { %v4420_v25 = vpop.eup %4419 }
 0x8d4   :  { %v3874_v15 = vpop.f32.mrb[40].mxu0  ;;  %v3272_v36 = vmul.f32 %v4420_v25, %v4418_v33 }
 0x8d5   :  { %v3434_v35 = vadd.f32 %v3874_v15, %v5305_v38  ;;  %v3425_v0 = vpop.f32.mrb[41].mxu0 }
 0x8d6   :  { %v3426_v37 = vadd.f32 %v5305_v38, %v3425_v0  ;;  %v3875_v39 = vpop.f32.mrb[42].mxu0  ;;  %v3273_v42 = vpack.c.bf16 %v3272_v36, %v3271_v32 }
 0x8d7   :  { %3466 = vst [vmem:[#allocation14 + $0x50] sm:$0xff] %v3434_v35  ;;  %v3437_v40 = vadd.f32 %v3875_v39, %v5305_v38  ;;  %v3428_v41 = vpop.f32.mrb[43].mxu0 }
 0x8d8   :  { %3464 = vst [vmem:[#allocation14 + $0x40] sm:$0xff] %v3426_v37  ;;  %v3429_v44 = vadd.f32 %v5305_v38, %v3428_v41  ;;  %3877 = vmatmul.mubr.bf16.gmra.mrb[44].mxu0 %v3273_v42 }
 0x8d9   :  { %3467 = vst [vmem:[#allocation14 + $0x58] sm:$0xff] %v3437_v40 }
 0x8da   :  { %3465 = vst [vmem:[#allocation14 + $0x48] sm:$0xff] %v3429_v44 }
 0x9ab   :  { %v3878_v45 = vpop.f32.mrb[44].mxu0 }
 0x9ac   :  { %v3450_v14 = vadd.f32 %v3878_v45, %v5305_v38  ;;  %v3441_v11 = vpop.f32.mrb[45].mxu0 }
 0x9ad   :  { %v3442_v26 = vadd.f32 %v5305_v38, %v3441_v11  ;;  %v3879_v13 = vpop.f32.mrb[46].mxu0 }
 0x9ae   :  { %3470 = vst [vmem:[#allocation14 + $0x70] sm:$0xff] %v3450_v14  ;;  %v3453_v17 = vadd.f32 %v3879_v13, %v5305_v38  ;;  %v3444_v50 = vpop.f32.mrb[47].mxu0 }
 0x9af   :  { %3468 = vst [vmem:[#allocation14 + $0x60] sm:$0xff] %v3442_v26  ;;  %v3445_v8 = vadd.f32 %v5305_v38, %v3444_v50 }
 0x9b0   :  { %3471 = vst [vmem:[#allocation14 + $0x78] sm:$0xff] %v3453_v17 }
 0x9b1   :  { %3469 = vst [vmem:[#allocation14 + $0x68] sm:$0xff] %v3445_v8 }
 0x9b2   :  { %4520 = shalt.err (!%p4517_p8)
}
 0x9b3   :  { %s4521_s27 = scalar_lea.hbm %s5342_s6, 2048 }
 0x9b4   :  { %p4522_p9 = scmp.ne.s32.totalorder %s5342_s6, %s4521_s27  ;;  %p4525_p10 = scmp.lt.u32.totalorder %s4521_s27, %s5342_s6 }
 0x9b6   :  { %p4527_p11 = pnand %p4525_p10, %p4522_p9 }
 0x9b8   :  { %4530 = shalt.err (!%p4527_p11)
}
 0x9b9   :  { %s4550_s10 = smov 128   ;;  %s4551_s11 = smov 8  }
 0x9ba   :  { %3483 = dma.vmem_to_hbm [thread:$0]  %s3478_s21, 2048, %s5342_s6, [#allocation8], %s4550_s10, %s4550_s10, %s4551_s11  }
 0x9bb   :  { %4537 = dma.done.wait [#allocation8], 2048  }
 0x9bc   :  { %4538 = vsyncadd [#allocation8], 4294965248 }
 0x9bd   :  { %3487 = vsyncpa [#allocation7], 1 }
 0x9be   :  { %3488 = vsyncpa [#allocation10], 1 }
 0x9bf   :  { %3489 = vsyncpa [#allocation13], 1 }
 0x9c0   :  { %3490 = vsyncpa [#allocation8], 1 }

</bundles_post_ra>
